<compile_context>
chip_gen: v7x
topology: tpu7x:2x2x1
jax: 0.10.0
libtpu: 0.0.40
codegen_flags: <defaults>
</compile_context>

<pallas_src>
import functools

import jax
import jax.numpy as jnp
from jax import lax
from jax.experimental import pallas as pl
from jax.experimental.pallas import tpu as pltpu


def _spiking_hopfield_kernel(
    x_ref,        # (n_steps, Np) f32  input spikes (VMEM)
    wT_hbm_ref,   # (Np, Np)      bf16 W transposed, raw HBM (memory_space=ANY)
    mem_in_ref,   # (1, Np)       f32  initial membrane potential (VMEM)
    spk_out_ref,  # (n_steps, Np) f32  spike trace of the LAST iteration
    mem_out_ref,  # (1, Np)       f32  final membrane potential
    spk_scr,      # (1, Np)       f32  scratch: current spike state
    mem_scr,      # (1, Np)       f32  scratch: current membrane state
    w_scr,        # (Np, Np)      bf16 scratch: VMEM-resident copy of W^T
    w_sem,        # DMA semaphore for the one-shot W copy
    *,
    n_steps: int,
    iterations: int,
    beta: float,
    threshold: float,
):
    # Stage W^T into VMEM exactly once (single-buffered; reused every step).
    w_copy = pltpu.make_async_copy(wT_hbm_ref, w_scr, w_sem)
    w_copy.start()

    # spk = where(x[0] == 1, 1, 0); mem = mem_in  (overlapped with the W DMA).
    spk_scr[...] = jnp.where(x_ref[0:1, :] == 1.0, 1.0, 0.0).astype(jnp.float32)
    mem_scr[...] = mem_in_ref[...]

    w_copy.wait()

    inner_unroll = True if n_steps <= 16 else 8

    def one_step(t, record: bool):
        extern = x_ref[pl.ds(t, 1), :]                          # (1, Np) f32
        # W @ spk == spk_row @ W^T ; bf16 operands, f32 MXU accumulate.
        recur = jnp.dot(spk_scr[...].astype(jnp.bfloat16), w_scr[...],
                        preferred_element_type=jnp.float32)     # (1, Np) f32
        inp = extern + recur

        mem_prev = mem_scr[...]
        reset = (mem_prev > threshold).astype(jnp.float32)      # off previous mem
        mem_new = beta * mem_prev + inp - reset * threshold     # "subtract" reset
        spk_new = (mem_new > threshold).astype(jnp.float32)     # fire on new mem

        mem_scr[...] = mem_new
        spk_scr[...] = spk_new
        if record:
            spk_out_ref[pl.ds(t, 1), :] = spk_new               # final iter only

    def warm_step(t, carry):
        one_step(t, record=False)
        return carry

    def rec_step(t, carry):
        one_step(t, record=True)
        return carry

    # iterations - 1 warm-up passes: no trace stores (they'd be overwritten).
    def warm_iter(it, carry):
        return lax.fori_loop(0, n_steps, warm_step, carry, unroll=inner_unroll)

    lax.fori_loop(0, iterations - 1, warm_iter, 0)

    # Final pass: the only one whose spike trace persists (matches torch ref).
    lax.fori_loop(0, n_steps, rec_step, 0, unroll=inner_unroll)

    mem_out_ref[...] = mem_scr[...]


def _round_up(v: int, m: int) -> int:
    return ((v + m - 1) // m) * m


def spiking_hopfield_forward(x, weights, mem, *, n_steps, iterations,
                             beta=0.9, threshold=0.5):
    """Pallas implementation of SpikingHopfield.forward.

    Returns (spike_trace_of_last_iteration (n_steps, N), final_mem (N,)).
    """
    assert iterations >= 1, "iterations must be >= 1 (reference indexes all_spikes[-1])"
    n_neurons = x.shape[1]
    assert x.shape == (n_steps, n_neurons)
    assert weights.shape == (n_neurons, n_neurons)
    assert mem.shape == (n_neurons,)

    # Pad neuron axis to a lane-dense multiple of 128. Zero padding is inert:
    # padded weight rows/cols are zero and padded neurons never cross a
    # positive threshold, so they neither fire nor feed real neurons.
    n_pad = _round_up(n_neurons, 128)
    pad = n_pad - n_neurons

    x_p = jnp.pad(x.astype(jnp.float32), ((0, 0), (0, pad)))
    w_p = jnp.pad(weights.astype(jnp.float32), ((0, pad), (0, pad)))
    mem_p = jnp.pad(mem.astype(jnp.float32), (0, pad)).reshape(1, n_pad)

    # Transpose once (so the recurrence is row-vector @ W^T) and cast to bf16:
    # MXU-native on v5e/v6e/v7x and halves the resident W footprint.
    w_t = w_p.T.astype(jnp.bfloat16)

    # Explicit VMEM budget from the actual resident buffers (+ slack).
    f32 = 4
    vmem_bytes = (
        n_pad * n_pad * 2                   # W^T VMEM scratch (bf16, single-buffered)
        + 2 * n_steps * n_pad * f32         # x input (double-buffered)
        + 2 * n_steps * n_pad * f32         # spike-trace output (double-buffered)
        + 4 * n_pad * f32                   # mem in/out blocks (double-buffered)
        + 2 * n_pad * f32                   # spk/mem state scratch
    )
    vmem_limit = int(min(max(2 * vmem_bytes, 8 << 20) + (2 << 20), 100 << 20))

    kernel = functools.partial(
        _spiking_hopfield_kernel,
        n_steps=n_steps, iterations=iterations,
        beta=float(beta), threshold=float(threshold),
    )

    spikes, mem_out = pl.pallas_call(
        kernel,
        out_shape=(
            jax.ShapeDtypeStruct((n_steps, n_pad), jnp.float32),
            jax.ShapeDtypeStruct((1, n_pad), jnp.float32),
        ),
        grid_spec=pltpu.PrefetchScalarGridSpec(
            num_scalar_prefetch=0,
            grid=(1,),
            in_specs=[
                pl.BlockSpec((n_steps, n_pad), lambda i: (0, 0)),
                pl.BlockSpec(memory_space=pl.ANY),        # W^T stays in HBM; DMA'd once
                pl.BlockSpec((1, n_pad), lambda i: (0, 0)),
            ],
            out_specs=[
                pl.BlockSpec((n_steps, n_pad), lambda i: (0, 0)),
                pl.BlockSpec((1, n_pad), lambda i: (0, 0)),
            ],
            scratch_shapes=[
                pltpu.VMEM((1, n_pad), jnp.float32),        # spk state
                pltpu.VMEM((1, n_pad), jnp.float32),        # mem state
                pltpu.VMEM((n_pad, n_pad), jnp.bfloat16),   # resident W^T
                pltpu.SemaphoreType.DMA,                    # W copy semaphore
            ],
        ),
        compiler_params=pltpu.CompilerParams(
            dimension_semantics=("arbitrary",),
            vmem_limit_bytes=vmem_limit,
        ),
    )(x_p, w_t, mem_p)

    return spikes[:, :n_neurons], mem_out[0, :n_neurons]


def _reference_forward(x, weights, mem, *, n_steps, iterations,
                       beta=0.9, threshold=0.5):
    """Pure-JAX reference mirroring the PyTorch/snntorch loop."""
    spk = jnp.where(x[0] == 1.0, 1.0, 0.0).astype(jnp.float32)
    mem = mem.astype(jnp.float32)
    w = weights.astype(jnp.float32)
    trace = None
    for _ in range(iterations):
        rows = []
        for t in range(n_steps):
            inp = x[t].astype(jnp.float32) + w @ spk
            reset = (mem > threshold).astype(jnp.float32)
            mem = beta * mem + inp - reset * threshold
            spk = (mem > threshold).astype(jnp.float32)
            rows.append(spk)
        trace = jnp.stack(rows)
    return trace, mem


def _run_case(key, n_neurons, n_steps, iterations, beta, threshold):
    kx, kw, km = jax.random.split(key, 3)

    # Binary input spike raster (n_steps, n_neurons).
    x = (jax.random.uniform(kx, (n_steps, n_neurons)) < 0.3).astype(jnp.float32)

    # Small deterministic Hopfield-style weights (zero diagonal) so the matmul
    # path is exercised (module __init__ uses zeros, which would be trivial).
    w = 0.05 * jax.random.normal(kw, (n_neurons, n_neurons), dtype=jnp.float32)
    w = w * (1.0 - jnp.eye(n_neurons, dtype=jnp.float32))

    mem0 = 0.1 * jax.random.normal(km, (n_neurons,), dtype=jnp.float32)

    spikes, mem_final = spiking_hopfield_forward(
        x, w, mem0, n_steps=n_steps, iterations=iterations,
        beta=beta, threshold=threshold)
    jax.block_until_ready((spikes, mem_final))

    # Reference uses the same bf16-rounded weights the kernel sees, so the only
    # numerical difference is f32 accumulation order.
    w_bf = w.astype(jnp.bfloat16).astype(jnp.float32)
    ref_spikes, ref_mem = _reference_forward(
        x, w_bf, mem0, n_steps=n_steps, iterations=iterations,
        beta=beta, threshold=threshold)

    assert spikes.shape == (n_steps, n_neurons)
    assert mem_final.shape == (n_neurons,)
    assert jnp.allclose(spikes, ref_spikes), "spike trace mismatch"
    assert jnp.allclose(mem_final, ref_mem, atol=1e-3, rtol=1e-3), "mem mismatch"


if __name__ == "__main__":
    key = jax.random.PRNGKey(0)
    k1, k2 = jax.random.split(key)

    # Lane-aligned case (n_neurons multiple of 128).
    _run_case(k1, n_neurons=128, n_steps=8, iterations=5, beta=0.9, threshold=0.5)
    # Non-aligned case to exercise the zero-padding path.
    _run_case(k2, n_neurons=100, n_steps=8, iterations=3, beta=0.9, threshold=0.5)

    print("KERNEL_OK")
</pallas_src>

<mosaic_0001>
module attributes {stable_mosaic.version = 11 : i64} {
  func.func @_spiking_hopfield_kernel(%arg0: i32, %arg1: memref<8x128xf32, #tpu.memory_space<vmem>>, %arg2: memref<128x128xbf16, #tpu.memory_space<any>>, %arg3: memref<1x128xf32, #tpu.memory_space<vmem>>, %arg4: memref<8x128xf32, #tpu.memory_space<vmem>>, %arg5: memref<1x128xf32, #tpu.memory_space<vmem>>, %arg6: memref<1x128xf32, #tpu.memory_space<vmem>>, %arg7: memref<1x128xf32, #tpu.memory_space<vmem>>, %arg8: memref<128x128xbf16, #tpu.memory_space<vmem>>, %arg9: memref<!tpu.dma_semaphore, #tpu.memory_space<semaphore_mem>>) attributes {dimension_semantics = [#tpu.dimension_semantics<arbitrary>], iteration_bounds = array<i64: 1>, scalar_prefetch = 0 : i64, scratch_operands = 4 : i64, tpu.core_type = #tpu.core_type<tc>, window_params = [{pipeline_mode = #tpu.pipeline_mode<synchronous>, transform_indices = @transform_0, window_bounds = array<i64: 8, 128>}, {}, {pipeline_mode = #tpu.pipeline_mode<synchronous>, transform_indices = @transform_2, window_bounds = array<i64: 1, 128>}, {pipeline_mode = #tpu.pipeline_mode<synchronous>, transform_indices = @transform_3, window_bounds = array<i64: 8, 128>}, {pipeline_mode = #tpu.pipeline_mode<synchronous>, transform_indices = @transform_4, window_bounds = array<i64: 1, 128>}]} {
    tpu.enqueue_dma source(%arg2 : memref<128x128xbf16, #tpu.memory_space<any>>) target(%arg8 : memref<128x128xbf16, #tpu.memory_space<vmem>>) target_semaphore(%arg9 : memref<!tpu.dma_semaphore, #tpu.memory_space<semaphore_mem>>)
    %c0 = arith.constant 0 : index
    %c0_0 = arith.constant 0 : index
    %0 = vector.load %arg1[%c0, %c0_0] : memref<8x128xf32, #tpu.memory_space<vmem>>, vector<1x128xf32>
    %cst = arith.constant 1.000000e+00 : f32
    %1 = vector.broadcast %cst : f32 to vector<1x128xf32>
    %2 = arith.cmpf oeq, %0, %1 : vector<1x128xf32>
    %cst_1 = arith.constant 1.000000e+00 : f32
    %cst_2 = arith.constant 0.000000e+00 : f32
    %3 = vector.broadcast %cst_1 : f32 to vector<1x128xf32>
    %4 = vector.broadcast %cst_2 : f32 to vector<1x128xf32>
    %5 = arith.select %2, %3, %4 : vector<1x128xi1>, vector<1x128xf32>
    %c0_3 = arith.constant 0 : index
    %c0_4 = arith.constant 0 : index
    %6 = vector.load %arg6[%c0_3, %c0_4] : memref<1x128xf32, #tpu.memory_space<vmem>>, vector<1x128xf32>
    tpu.vector_store %arg6[%c0_3, %c0_4], %5 {strides = array<i32>} : memref<1x128xf32, #tpu.memory_space<vmem>>, vector<1x128xf32>,
    %c0_5 = arith.constant 0 : index
    %c0_6 = arith.constant 0 : index
    %7 = vector.load %arg3[%c0_5, %c0_6] : memref<1x128xf32, #tpu.memory_space<vmem>>, vector<1x128xf32>
    %c0_7 = arith.constant 0 : index
    %c0_8 = arith.constant 0 : index
    %8 = vector.load %arg7[%c0_7, %c0_8] : memref<1x128xf32, #tpu.memory_space<vmem>>, vector<1x128xf32>
    tpu.vector_store %arg7[%c0_7, %c0_8], %7 {strides = array<i32>} : memref<1x128xf32, #tpu.memory_space<vmem>>, vector<1x128xf32>,
    tpu.wait_dma2 semaphore(%arg9 : memref<!tpu.dma_semaphore, #tpu.memory_space<semaphore_mem>>) src(%arg2 : memref<128x128xbf16, #tpu.memory_space<any>>) dst(%arg8 : memref<128x128xbf16, #tpu.memory_space<vmem>>)
    %c0_i32 = arith.constant 0 : i32
    %c4_i32 = arith.constant 4 : i32
    %9 = arith.addi %c0_i32, %c4_i32 : i32
    %c1_i32 = arith.constant 1 : i32
    scf.for %arg10 = %c0_i32 to %9 step %c1_i32  : i32 {
      %c0_i32_152 = arith.constant 0 : i32
      %220 = arith.index_cast %c0_i32_152 : i32 to index
      %c0_153 = arith.constant 0 : index
      %221 = vector.load %arg1[%220, %c0_153] : memref<8x128xf32, #tpu.memory_space<vmem>>, vector<1x128xf32>
      %c0_154 = arith.constant 0 : index
      %c0_155 = arith.constant 0 : index
      %222 = vector.load %arg6[%c0_154, %c0_155] : memref<1x128xf32, #tpu.memory_space<vmem>>, vector<1x128xf32>
      %223 = arith.truncf %222 : vector<1x128xf32> to vector<1x128xbf16>
      %c0_156 = arith.constant 0 : index
      %c0_157 = arith.constant 0 : index
      %224 = vector.load %arg8[%c0_156, %c0_157] : memref<128x128xbf16, #tpu.memory_space<vmem>>, vector<128x128xbf16>
      %cst_158 = arith.constant dense<0.000000e+00> : vector<1x128xf32>
      %225 = tpu.matmul %223, %224, %cst_158 {dimension_numbers = #tpu.dot_dimension_numbers<[1], [0], [0], [1], [0, 0, 1, 1], [], []>} : vector<1x128xbf16>, vector<128x128xbf16>, vector<1x128xf32> -> vector<1x128xf32>
      %226 = arith.addf %221, %225 : vector<1x128xf32>
      %c0_159 = arith.constant 0 : index
      %c0_160 = arith.constant 0 : index
      %227 = vector.load %arg7[%c0_159, %c0_160] : memref<1x128xf32, #tpu.memory_space<vmem>>, vector<1x128xf32>
      %cst_161 = arith.constant 5.000000e-01 : f32
      %228 = vector.broadcast %cst_161 : f32 to vector<1x128xf32>
      %229 = arith.cmpf ogt, %227, %228 : vector<1x128xf32>
      %230 = arith.extui %229 : vector<1x128xi1> to vector<1x128xi32>
      %231 = arith.sitofp %230 : vector<1x128xi32> to vector<1x128xf32>
      %cst_162 = arith.constant 0.899999976 : f32
      %232 = vector.broadcast %cst_162 : f32 to vector<1x128xf32>
      %233 = arith.mulf %232, %227 : vector<1x128xf32>
      %234 = arith.addf %233, %226 : vector<1x128xf32>
      %cst_163 = arith.constant 5.000000e-01 : f32
      %235 = vector.broadcast %cst_163 : f32 to vector<1x128xf32>
      %236 = arith.mulf %231, %235 : vector<1x128xf32>
      %237 = arith.subf %234, %236 : vector<1x128xf32>
      %cst_164 = arith.constant 5.000000e-01 : f32
      %238 = vector.broadcast %cst_164 : f32 to vector<1x128xf32>
      %239 = arith.cmpf ogt, %237, %238 : vector<1x128xf32>
      %240 = arith.extui %239 : vector<1x128xi1> to vector<1x128xi32>
      %241 = arith.sitofp %240 : vector<1x128xi32> to vector<1x128xf32>
      %c0_165 = arith.constant 0 : index
      %c0_166 = arith.constant 0 : index
      %242 = vector.load %arg7[%c0_165, %c0_166] : memref<1x128xf32, #tpu.memory_space<vmem>>, vector<1x128xf32>
      tpu.vector_store %arg7[%c0_165, %c0_166], %237 {strides = array<i32>} : memref<1x128xf32, #tpu.memory_space<vmem>>, vector<1x128xf32>,
      %c0_167 = arith.constant 0 : index
      %c0_168 = arith.constant 0 : index
      %243 = vector.load %arg6[%c0_167, %c0_168] : memref<1x128xf32, #tpu.memory_space<vmem>>, vector<1x128xf32>
      tpu.vector_store %arg6[%c0_167, %c0_168], %241 {strides = array<i32>} : memref<1x128xf32, #tpu.memory_space<vmem>>, vector<1x128xf32>,
      %c1_i32_169 = arith.constant 1 : i32
      %244 = arith.index_cast %c1_i32_169 : i32 to index
      %c0_170 = arith.constant 0 : index
      %245 = vector.load %arg1[%244, %c0_170] : memref<8x128xf32, #tpu.memory_space<vmem>>, vector<1x128xf32>
      %c0_171 = arith.constant 0 : index
      %c0_172 = arith.constant 0 : index
      %246 = vector.load %arg6[%c0_171, %c0_172] : memref<1x128xf32, #tpu.memory_space<vmem>>, vector<1x128xf32>
      %247 = arith.truncf %246 : vector<1x128xf32> to vector<1x128xbf16>
      %c0_173 = arith.constant 0 : index
      %c0_174 = arith.constant 0 : index
      %248 = vector.load %arg8[%c0_173, %c0_174] : memref<128x128xbf16, #tpu.memory_space<vmem>>, vector<128x128xbf16>
      %cst_175 = arith.constant dense<0.000000e+00> : vector<1x128xf32>
      %249 = tpu.matmul %247, %248, %cst_175 {dimension_numbers = #tpu.dot_dimension_numbers<[1], [0], [0], [1], [0, 0, 1, 1], [], []>} : vector<1x128xbf16>, vector<128x128xbf16>, vector<1x128xf32> -> vector<1x128xf32>
      %250 = arith.addf %245, %249 : vector<1x128xf32>
      %c0_176 = arith.constant 0 : index
      %c0_177 = arith.constant 0 : index
      %251 = vector.load %arg7[%c0_176, %c0_177] : memref<1x128xf32, #tpu.memory_space<vmem>>, vector<1x128xf32>
      %cst_178 = arith.constant 5.000000e-01 : f32
      %252 = vector.broadcast %cst_178 : f32 to vector<1x128xf32>
      %253 = arith.cmpf ogt, %251, %252 : vector<1x128xf32>
      %254 = arith.extui %253 : vector<1x128xi1> to vector<1x128xi32>
      %255 = arith.sitofp %254 : vector<1x128xi32> to vector<1x128xf32>
      %cst_179 = arith.constant 0.899999976 : f32
      %256 = vector.broadcast %cst_179 : f32 to vector<1x128xf32>
      %257 = arith.mulf %256, %251 : vector<1x128xf32>
      %258 = arith.addf %257, %250 : vector<1x128xf32>
      %cst_180 = arith.constant 5.000000e-01 : f32
      %259 = vector.broadcast %cst_180 : f32 to vector<1x128xf32>
      %260 = arith.mulf %255, %259 : vector<1x128xf32>
      %261 = arith.subf %258, %260 : vector<1x128xf32>
      %cst_181 = arith.constant 5.000000e-01 : f32
      %262 = vector.broadcast %cst_181 : f32 to vector<1x128xf32>
      %263 = arith.cmpf ogt, %261, %262 : vector<1x128xf32>
      %264 = arith.extui %263 : vector<1x128xi1> to vector<1x128xi32>
      %265 = arith.sitofp %264 : vector<1x128xi32> to vector<1x128xf32>
      %c0_182 = arith.constant 0 : index
      %c0_183 = arith.constant 0 : index
      %266 = vector.load %arg7[%c0_182, %c0_183] : memref<1x128xf32, #tpu.memory_space<vmem>>, vector<1x128xf32>
      tpu.vector_store %arg7[%c0_182, %c0_183], %261 {strides = array<i32>} : memref<1x128xf32, #tpu.memory_space<vmem>>, vector<1x128xf32>,
      %c0_184 = arith.constant 0 : index
      %c0_185 = arith.constant 0 : index
      %267 = vector.load %arg6[%c0_184, %c0_185] : memref<1x128xf32, #tpu.memory_space<vmem>>, vector<1x128xf32>
      tpu.vector_store %arg6[%c0_184, %c0_185], %265 {strides = array<i32>} : memref<1x128xf32, #tpu.memory_space<vmem>>, vector<1x128xf32>,
      %c2_i32_186 = arith.constant 2 : i32
      %268 = arith.index_cast %c2_i32_186 : i32 to index
      %c0_187 = arith.constant 0 : index
      %269 = vector.load %arg1[%268, %c0_187] : memref<8x128xf32, #tpu.memory_space<vmem>>, vector<1x128xf32>
      %c0_188 = arith.constant 0 : index
      %c0_189 = arith.constant 0 : index
      %270 = vector.load %arg6[%c0_188, %c0_189] : memref<1x128xf32, #tpu.memory_space<vmem>>, vector<1x128xf32>
      %271 = arith.truncf %270 : vector<1x128xf32> to vector<1x128xbf16>
      %c0_190 = arith.constant 0 : index
      %c0_191 = arith.constant 0 : index
      %272 = vector.load %arg8[%c0_190, %c0_191] : memref<128x128xbf16, #tpu.memory_space<vmem>>, vector<128x128xbf16>
      %cst_192 = arith.constant dense<0.000000e+00> : vector<1x128xf32>
      %273 = tpu.matmul %271, %272, %cst_192 {dimension_numbers = #tpu.dot_dimension_numbers<[1], [0], [0], [1], [0, 0, 1, 1], [], []>} : vector<1x128xbf16>, vector<128x128xbf16>, vector<1x128xf32> -> vector<1x128xf32>
      %274 = arith.addf %269, %273 : vector<1x128xf32>
      %c0_193 = arith.constant 0 : index
      %c0_194 = arith.constant 0 : index
      %275 = vector.load %arg7[%c0_193, %c0_194] : memref<1x128xf32, #tpu.memory_space<vmem>>, vector<1x128xf32>
      %cst_195 = arith.constant 5.000000e-01 : f32
      %276 = vector.broadcast %cst_195 : f32 to vector<1x128xf32>
      %277 = arith.cmpf ogt, %275, %276 : vector<1x128xf32>
      %278 = arith.extui %277 : vector<1x128xi1> to vector<1x128xi32>
      %279 = arith.sitofp %278 : vector<1x128xi32> to vector<1x128xf32>
      %cst_196 = arith.constant 0.899999976 : f32
      %280 = vector.broadcast %cst_196 : f32 to vector<1x128xf32>
      %281 = arith.mulf %280, %275 : vector<1x128xf32>
      %282 = arith.addf %281, %274 : vector<1x128xf32>
      %cst_197 = arith.constant 5.000000e-01 : f32
      %283 = vector.broadcast %cst_197 : f32 to vector<1x128xf32>
      %284 = arith.mulf %279, %283 : vector<1x128xf32>
      %285 = arith.subf %282, %284 : vector<1x128xf32>
      %cst_198 = arith.constant 5.000000e-01 : f32
      %286 = vector.broadcast %cst_198 : f32 to vector<1x128xf32>
      %287 = arith.cmpf ogt, %285, %286 : vector<1x128xf32>
      %288 = arith.extui %287 : vector<1x128xi1> to vector<1x128xi32>
      %289 = arith.sitofp %288 : vector<1x128xi32> to vector<1x128xf32>
      %c0_199 = arith.constant 0 : index
      %c0_200 = arith.constant 0 : index
      %290 = vector.load %arg7[%c0_199, %c0_200] : memref<1x128xf32, #tpu.memory_space<vmem>>, vector<1x128xf32>
      tpu.vector_store %arg7[%c0_199, %c0_200], %285 {strides = array<i32>} : memref<1x128xf32, #tpu.memory_space<vmem>>, vector<1x128xf32>,
      %c0_201 = arith.constant 0 : index
      %c0_202 = arith.constant 0 : index
      %291 = vector.load %arg6[%c0_201, %c0_202] : memref<1x128xf32, #tpu.memory_space<vmem>>, vector<1x128xf32>
      tpu.vector_store %arg6[%c0_201, %c0_202], %289 {strides = array<i32>} : memref<1x128xf32, #tpu.memory_space<vmem>>, vector<1x128xf32>,
      %c3_i32_203 = arith.constant 3 : i32
      %292 = arith.index_cast %c3_i32_203 : i32 to index
      %c0_204 = arith.constant 0 : index
      %293 = vector.load %arg1[%292, %c0_204] : memref<8x128xf32, #tpu.memory_space<vmem>>, vector<1x128xf32>
      %c0_205 = arith.constant 0 : index
      %c0_206 = arith.constant 0 : index
      %294 = vector.load %arg6[%c0_205, %c0_206] : memref<1x128xf32, #tpu.memory_space<vmem>>, vector<1x128xf32>
      %295 = arith.truncf %294 : vector<1x128xf32> to vector<1x128xbf16>
      %c0_207 = arith.constant 0 : index
      %c0_208 = arith.constant 0 : index
      %296 = vector.load %arg8[%c0_207, %c0_208] : memref<128x128xbf16, #tpu.memory_space<vmem>>, vector<128x128xbf16>
      %cst_209 = arith.constant dense<0.000000e+00> : vector<1x128xf32>
      %297 = tpu.matmul %295, %296, %cst_209 {dimension_numbers = #tpu.dot_dimension_numbers<[1], [0], [0], [1], [0, 0, 1, 1], [], []>} : vector<1x128xbf16>, vector<128x128xbf16>, vector<1x128xf32> -> vector<1x128xf32>
      %298 = arith.addf %293, %297 : vector<1x128xf32>
      %c0_210 = arith.constant 0 : index
      %c0_211 = arith.constant 0 : index
      %299 = vector.load %arg7[%c0_210, %c0_211] : memref<1x128xf32, #tpu.memory_space<vmem>>, vector<1x128xf32>
      %cst_212 = arith.constant 5.000000e-01 : f32
      %300 = vector.broadcast %cst_212 : f32 to vector<1x128xf32>
      %301 = arith.cmpf ogt, %299, %300 : vector<1x128xf32>
      %302 = arith.extui %301 : vector<1x128xi1> to vector<1x128xi32>
      %303 = arith.sitofp %302 : vector<1x128xi32> to vector<1x128xf32>
      %cst_213 = arith.constant 0.899999976 : f32
      %304 = vector.broadcast %cst_213 : f32 to vector<1x128xf32>
      %305 = arith.mulf %304, %299 : vector<1x128xf32>
      %306 = arith.addf %305, %298 : vector<1x128xf32>
      %cst_214 = arith.constant 5.000000e-01 : f32
      %307 = vector.broadcast %cst_214 : f32 to vector<1x128xf32>
      %308 = arith.mulf %303, %307 : vector<1x128xf32>
      %309 = arith.subf %306, %308 : vector<1x128xf32>
      %cst_215 = arith.constant 5.000000e-01 : f32
      %310 = vector.broadcast %cst_215 : f32 to vector<1x128xf32>
      %311 = arith.cmpf ogt, %309, %310 : vector<1x128xf32>
      %312 = arith.extui %311 : vector<1x128xi1> to vector<1x128xi32>
      %313 = arith.sitofp %312 : vector<1x128xi32> to vector<1x128xf32>
      %c0_216 = arith.constant 0 : index
      %c0_217 = arith.constant 0 : index
      %314 = vector.load %arg7[%c0_216, %c0_217] : memref<1x128xf32, #tpu.memory_space<vmem>>, vector<1x128xf32>
      tpu.vector_store %arg7[%c0_216, %c0_217], %309 {strides = array<i32>} : memref<1x128xf32, #tpu.memory_space<vmem>>, vector<1x128xf32>,
      %c0_218 = arith.constant 0 : index
      %c0_219 = arith.constant 0 : index
      %315 = vector.load %arg6[%c0_218, %c0_219] : memref<1x128xf32, #tpu.memory_space<vmem>>, vector<1x128xf32>
      tpu.vector_store %arg6[%c0_218, %c0_219], %313 {strides = array<i32>} : memref<1x128xf32, #tpu.memory_space<vmem>>, vector<1x128xf32>,
      %c4_i32_220 = arith.constant 4 : i32
      %316 = arith.index_cast %c4_i32_220 : i32 to index
      %c0_221 = arith.constant 0 : index
      %317 = vector.load %arg1[%316, %c0_221] : memref<8x128xf32, #tpu.memory_space<vmem>>, vector<1x128xf32>
      %c0_222 = arith.constant 0 : index
      %c0_223 = arith.constant 0 : index
      %318 = vector.load %arg6[%c0_222, %c0_223] : memref<1x128xf32, #tpu.memory_space<vmem>>, vector<1x128xf32>
      %319 = arith.truncf %318 : vector<1x128xf32> to vector<1x128xbf16>
      %c0_224 = arith.constant 0 : index
      %c0_225 = arith.constant 0 : index
      %320 = vector.load %arg8[%c0_224, %c0_225] : memref<128x128xbf16, #tpu.memory_space<vmem>>, vector<128x128xbf16>
      %cst_226 = arith.constant dense<0.000000e+00> : vector<1x128xf32>
      %321 = tpu.matmul %319, %320, %cst_226 {dimension_numbers = #tpu.dot_dimension_numbers<[1], [0], [0], [1], [0, 0, 1, 1], [], []>} : vector<1x128xbf16>, vector<128x128xbf16>, vector<1x128xf32> -> vector<1x128xf32>
      %322 = arith.addf %317, %321 : vector<1x128xf32>
      %c0_227 = arith.constant 0 : index
      %c0_228 = arith.constant 0 : index
      %323 = vector.load %arg7[%c0_227, %c0_228] : memref<1x128xf32, #tpu.memory_space<vmem>>, vector<1x128xf32>
      %cst_229 = arith.constant 5.000000e-01 : f32
      %324 = vector.broadcast %cst_229 : f32 to vector<1x128xf32>
      %325 = arith.cmpf ogt, %323, %324 : vector<1x128xf32>
      %326 = arith.extui %325 : vector<1x128xi1> to vector<1x128xi32>
      %327 = arith.sitofp %326 : vector<1x128xi32> to vector<1x128xf32>
      %cst_230 = arith.constant 0.899999976 : f32
      %328 = vector.broadcast %cst_230 : f32 to vector<1x128xf32>
      %329 = arith.mulf %328, %323 : vector<1x128xf32>
      %330 = arith.addf %329, %322 : vector<1x128xf32>
      %cst_231 = arith.constant 5.000000e-01 : f32
      %331 = vector.broadcast %cst_231 : f32 to vector<1x128xf32>
      %332 = arith.mulf %327, %331 : vector<1x128xf32>
      %333 = arith.subf %330, %332 : vector<1x128xf32>
      %cst_232 = arith.constant 5.000000e-01 : f32
      %334 = vector.broadcast %cst_232 : f32 to vector<1x128xf32>
      %335 = arith.cmpf ogt, %333, %334 : vector<1x128xf32>
      %336 = arith.extui %335 : vector<1x128xi1> to vector<1x128xi32>
      %337 = arith.sitofp %336 : vector<1x128xi32> to vector<1x128xf32>
      %c0_233 = arith.constant 0 : index
      %c0_234 = arith.constant 0 : index
      %338 = vector.load %arg7[%c0_233, %c0_234] : memref<1x128xf32, #tpu.memory_space<vmem>>, vector<1x128xf32>
      tpu.vector_store %arg7[%c0_233, %c0_234], %333 {strides = array<i32>} : memref<1x128xf32, #tpu.memory_space<vmem>>, vector<1x128xf32>,
      %c0_235 = arith.constant 0 : index
      %c0_236 = arith.constant 0 : index
      %339 = vector.load %arg6[%c0_235, %c0_236] : memref<1x128xf32, #tpu.memory_space<vmem>>, vector<1x128xf32>
      tpu.vector_store %arg6[%c0_235, %c0_236], %337 {strides = array<i32>} : memref<1x128xf32, #tpu.memory_space<vmem>>, vector<1x128xf32>,
      %c5_i32_237 = arith.constant 5 : i32
      %340 = arith.index_cast %c5_i32_237 : i32 to index
      %c0_238 = arith.constant 0 : index
      %341 = vector.load %arg1[%340, %c0_238] : memref<8x128xf32, #tpu.memory_space<vmem>>, vector<1x128xf32>
      %c0_239 = arith.constant 0 : index
      %c0_240 = arith.constant 0 : index
      %342 = vector.load %arg6[%c0_239, %c0_240] : memref<1x128xf32, #tpu.memory_space<vmem>>, vector<1x128xf32>
      %343 = arith.truncf %342 : vector<1x128xf32> to vector<1x128xbf16>
      %c0_241 = arith.constant 0 : index
      %c0_242 = arith.constant 0 : index
      %344 = vector.load %arg8[%c0_241, %c0_242] : memref<128x128xbf16, #tpu.memory_space<vmem>>, vector<128x128xbf16>
      %cst_243 = arith.constant dense<0.000000e+00> : vector<1x128xf32>
      %345 = tpu.matmul %343, %344, %cst_243 {dimension_numbers = #tpu.dot_dimension_numbers<[1], [0], [0], [1], [0, 0, 1, 1], [], []>} : vector<1x128xbf16>, vector<128x128xbf16>, vector<1x128xf32> -> vector<1x128xf32>
      %346 = arith.addf %341, %345 : vector<1x128xf32>
      %c0_244 = arith.constant 0 : index
      %c0_245 = arith.constant 0 : index
      %347 = vector.load %arg7[%c0_244, %c0_245] : memref<1x128xf32, #tpu.memory_space<vmem>>, vector<1x128xf32>
      %cst_246 = arith.constant 5.000000e-01 : f32
      %348 = vector.broadcast %cst_246 : f32 to vector<1x128xf32>
      %349 = arith.cmpf ogt, %347, %348 : vector<1x128xf32>
      %350 = arith.extui %349 : vector<1x128xi1> to vector<1x128xi32>
      %351 = arith.sitofp %350 : vector<1x128xi32> to vector<1x128xf32>
      %cst_247 = arith.constant 0.899999976 : f32
      %352 = vector.broadcast %cst_247 : f32 to vector<1x128xf32>
      %353 = arith.mulf %352, %347 : vector<1x128xf32>
      %354 = arith.addf %353, %346 : vector<1x128xf32>
      %cst_248 = arith.constant 5.000000e-01 : f32
      %355 = vector.broadcast %cst_248 : f32 to vector<1x128xf32>
      %356 = arith.mulf %351, %355 : vector<1x128xf32>
      %357 = arith.subf %354, %356 : vector<1x128xf32>
      %cst_249 = arith.constant 5.000000e-01 : f32
      %358 = vector.broadcast %cst_249 : f32 to vector<1x128xf32>
      %359 = arith.cmpf ogt, %357, %358 : vector<1x128xf32>
      %360 = arith.extui %359 : vector<1x128xi1> to vector<1x128xi32>
      %361 = arith.sitofp %360 : vector<1x128xi32> to vector<1x128xf32>
      %c0_250 = arith.constant 0 : index
      %c0_251 = arith.constant 0 : index
      %362 = vector.load %arg7[%c0_250, %c0_251] : memref<1x128xf32, #tpu.memory_space<vmem>>, vector<1x128xf32>
      tpu.vector_store %arg7[%c0_250, %c0_251], %357 {strides = array<i32>} : memref<1x128xf32, #tpu.memory_space<vmem>>, vector<1x128xf32>,
      %c0_252 = arith.constant 0 : index
      %c0_253 = arith.constant 0 : index
      %363 = vector.load %arg6[%c0_252, %c0_253] : memref<1x128xf32, #tpu.memory_space<vmem>>, vector<1x128xf32>
      tpu.vector_store %arg6[%c0_252, %c0_253], %361 {strides = array<i32>} : memref<1x128xf32, #tpu.memory_space<vmem>>, vector<1x128xf32>,
      %c6_i32_254 = arith.constant 6 : i32
      %364 = arith.index_cast %c6_i32_254 : i32 to index
      %c0_255 = arith.constant 0 : index
      %365 = vector.load %arg1[%364, %c0_255] : memref<8x128xf32, #tpu.memory_space<vmem>>, vector<1x128xf32>
      %c0_256 = arith.constant 0 : index
      %c0_257 = arith.constant 0 : index
      %366 = vector.load %arg6[%c0_256, %c0_257] : memref<1x128xf32, #tpu.memory_space<vmem>>, vector<1x128xf32>
      %367 = arith.truncf %366 : vector<1x128xf32> to vector<1x128xbf16>
      %c0_258 = arith.constant 0 : index
      %c0_259 = arith.constant 0 : index
      %368 = vector.load %arg8[%c0_258, %c0_259] : memref<128x128xbf16, #tpu.memory_space<vmem>>, vector<128x128xbf16>
      %cst_260 = arith.constant dense<0.000000e+00> : vector<1x128xf32>
      %369 = tpu.matmul %367, %368, %cst_260 {dimension_numbers = #tpu.dot_dimension_numbers<[1], [0], [0], [1], [0, 0, 1, 1], [], []>} : vector<1x128xbf16>, vector<128x128xbf16>, vector<1x128xf32> -> vector<1x128xf32>
      %370 = arith.addf %365, %369 : vector<1x128xf32>
      %c0_261 = arith.constant 0 : index
      %c0_262 = arith.constant 0 : index
      %371 = vector.load %arg7[%c0_261, %c0_262] : memref<1x128xf32, #tpu.memory_space<vmem>>, vector<1x128xf32>
      %cst_263 = arith.constant 5.000000e-01 : f32
      %372 = vector.broadcast %cst_263 : f32 to vector<1x128xf32>
      %373 = arith.cmpf ogt, %371, %372 : vector<1x128xf32>
      %374 = arith.extui %373 : vector<1x128xi1> to vector<1x128xi32>
      %375 = arith.sitofp %374 : vector<1x128xi32> to vector<1x128xf32>
      %cst_264 = arith.constant 0.899999976 : f32
      %376 = vector.broadcast %cst_264 : f32 to vector<1x128xf32>
      %377 = arith.mulf %376, %371 : vector<1x128xf32>
      %378 = arith.addf %377, %370 : vector<1x128xf32>
      %cst_265 = arith.constant 5.000000e-01 : f32
      %379 = vector.broadcast %cst_265 : f32 to vector<1x128xf32>
      %380 = arith.mulf %375, %379 : vector<1x128xf32>
      %381 = arith.subf %378, %380 : vector<1x128xf32>
      %cst_266 = arith.constant 5.000000e-01 : f32
      %382 = vector.broadcast %cst_266 : f32 to vector<1x128xf32>
      %383 = arith.cmpf ogt, %381, %382 : vector<1x128xf32>
      %384 = arith.extui %383 : vector<1x128xi1> to vector<1x128xi32>
      %385 = arith.sitofp %384 : vector<1x128xi32> to vector<1x128xf32>
      %c0_267 = arith.constant 0 : index
      %c0_268 = arith.constant 0 : index
      %386 = vector.load %arg7[%c0_267, %c0_268] : memref<1x128xf32, #tpu.memory_space<vmem>>, vector<1x128xf32>
      tpu.vector_store %arg7[%c0_267, %c0_268], %381 {strides = array<i32>} : memref<1x128xf32, #tpu.memory_space<vmem>>, vector<1x128xf32>,
      %c0_269 = arith.constant 0 : index
      %c0_270 = arith.constant 0 : index
      %387 = vector.load %arg6[%c0_269, %c0_270] : memref<1x128xf32, #tpu.memory_space<vmem>>, vector<1x128xf32>
      tpu.vector_store %arg6[%c0_269, %c0_270], %385 {strides = array<i32>} : memref<1x128xf32, #tpu.memory_space<vmem>>, vector<1x128xf32>,
      %c7_i32_271 = arith.constant 7 : i32
      %388 = arith.index_cast %c7_i32_271 : i32 to index
      %c0_272 = arith.constant 0 : index
      %389 = vector.load %arg1[%388, %c0_272] : memref<8x128xf32, #tpu.memory_space<vmem>>, vector<1x128xf32>
      %c0_273 = arith.constant 0 : index
      %c0_274 = arith.constant 0 : index
      %390 = vector.load %arg6[%c0_273, %c0_274] : memref<1x128xf32, #tpu.memory_space<vmem>>, vector<1x128xf32>
      %391 = arith.truncf %390 : vector<1x128xf32> to vector<1x128xbf16>
      %c0_275 = arith.constant 0 : index
      %c0_276 = arith.constant 0 : index
      %392 = vector.load %arg8[%c0_275, %c0_276] : memref<128x128xbf16, #tpu.memory_space<vmem>>, vector<128x128xbf16>
      %cst_277 = arith.constant dense<0.000000e+00> : vector<1x128xf32>
      %393 = tpu.matmul %391, %392, %cst_277 {dimension_numbers = #tpu.dot_dimension_numbers<[1], [0], [0], [1], [0, 0, 1, 1], [], []>} : vector<1x128xbf16>, vector<128x128xbf16>, vector<1x128xf32> -> vector<1x128xf32>
      %394 = arith.addf %389, %393 : vector<1x128xf32>
      %c0_278 = arith.constant 0 : index
      %c0_279 = arith.constant 0 : index
      %395 = vector.load %arg7[%c0_278, %c0_279] : memref<1x128xf32, #tpu.memory_space<vmem>>, vector<1x128xf32>
      %cst_280 = arith.constant 5.000000e-01 : f32
      %396 = vector.broadcast %cst_280 : f32 to vector<1x128xf32>
      %397 = arith.cmpf ogt, %395, %396 : vector<1x128xf32>
      %398 = arith.extui %397 : vector<1x128xi1> to vector<1x128xi32>
      %399 = arith.sitofp %398 : vector<1x128xi32> to vector<1x128xf32>
      %cst_281 = arith.constant 0.899999976 : f32
      %400 = vector.broadcast %cst_281 : f32 to vector<1x128xf32>
      %401 = arith.mulf %400, %395 : vector<1x128xf32>
      %402 = arith.addf %401, %394 : vector<1x128xf32>
      %cst_282 = arith.constant 5.000000e-01 : f32
      %403 = vector.broadcast %cst_282 : f32 to vector<1x128xf32>
      %404 = arith.mulf %399, %403 : vector<1x128xf32>
      %405 = arith.subf %402, %404 : vector<1x128xf32>
      %cst_283 = arith.constant 5.000000e-01 : f32
      %406 = vector.broadcast %cst_283 : f32 to vector<1x128xf32>
      %407 = arith.cmpf ogt, %405, %406 : vector<1x128xf32>
      %408 = arith.extui %407 : vector<1x128xi1> to vector<1x128xi32>
      %409 = arith.sitofp %408 : vector<1x128xi32> to vector<1x128xf32>
      %c0_284 = arith.constant 0 : index
      %c0_285 = arith.constant 0 : index
      %410 = vector.load %arg7[%c0_284, %c0_285] : memref<1x128xf32, #tpu.memory_space<vmem>>, vector<1x128xf32>
      tpu.vector_store %arg7[%c0_284, %c0_285], %405 {strides = array<i32>} : memref<1x128xf32, #tpu.memory_space<vmem>>, vector<1x128xf32>,
      %c0_286 = arith.constant 0 : index
      %c0_287 = arith.constant 0 : index
      %411 = vector.load %arg6[%c0_286, %c0_287] : memref<1x128xf32, #tpu.memory_space<vmem>>, vector<1x128xf32>
      tpu.vector_store %arg6[%c0_286, %c0_287], %409 {strides = array<i32>} : memref<1x128xf32, #tpu.memory_space<vmem>>, vector<1x128xf32>,
      %c8_i32_288 = arith.constant 8 : i32
    }
    %c0_i32_9 = arith.constant 0 : i32
    %10 = arith.index_cast %c0_i32_9 : i32 to index
    %c0_10 = arith.constant 0 : index
    %11 = vector.load %arg1[%10, %c0_10] : memref<8x128xf32, #tpu.memory_space<vmem>>, vector<1x128xf32>
    %c0_11 = arith.constant 0 : index
    %c0_12 = arith.constant 0 : index
    %12 = vector.load %arg6[%c0_11, %c0_12] : memref<1x128xf32, #tpu.memory_space<vmem>>, vector<1x128xf32>
    %13 = arith.truncf %12 : vector<1x128xf32> to vector<1x128xbf16>
    %c0_13 = arith.constant 0 : index
    %c0_14 = arith.constant 0 : index
    %14 = vector.load %arg8[%c0_13, %c0_14] : memref<128x128xbf16, #tpu.memory_space<vmem>>, vector<128x128xbf16>
    %cst_15 = arith.constant dense<0.000000e+00> : vector<1x128xf32>
    %15 = tpu.matmul %13, %14, %cst_15 {dimension_numbers = #tpu.dot_dimension_numbers<[1], [0], [0], [1], [0, 0, 1, 1], [], []>} : vector<1x128xbf16>, vector<128x128xbf16>, vector<1x128xf32> -> vector<1x128xf32>
    %16 = arith.addf %11, %15 : vector<1x128xf32>
    %c0_16 = arith.constant 0 : index
    %c0_17 = arith.constant 0 : index
    %17 = vector.load %arg7[%c0_16, %c0_17] : memref<1x128xf32, #tpu.memory_space<vmem>>, vector<1x128xf32>
    %cst_18 = arith.constant 5.000000e-01 : f32
    %18 = vector.broadcast %cst_18 : f32 to vector<1x128xf32>
    %19 = arith.cmpf ogt, %17, %18 : vector<1x128xf32>
    %20 = arith.extui %19 : vector<1x128xi1> to vector<1x128xi32>
    %21 = arith.sitofp %20 : vector<1x128xi32> to vector<1x128xf32>
    %cst_19 = arith.constant 0.899999976 : f32
    %22 = vector.broadcast %cst_19 : f32 to vector<1x128xf32>
    %23 = arith.mulf %22, %17 : vector<1x128xf32>
    %24 = arith.addf %23, %16 : vector<1x128xf32>
    %cst_20 = arith.constant 5.000000e-01 : f32
    %25 = vector.broadcast %cst_20 : f32 to vector<1x128xf32>
    %26 = arith.mulf %21, %25 : vector<1x128xf32>
    %27 = arith.subf %24, %26 : vector<1x128xf32>
    %cst_21 = arith.constant 5.000000e-01 : f32
    %28 = vector.broadcast %cst_21 : f32 to vector<1x128xf32>
    %29 = arith.cmpf ogt, %27, %28 : vector<1x128xf32>
    %30 = arith.extui %29 : vector<1x128xi1> to vector<1x128xi32>
    %31 = arith.sitofp %30 : vector<1x128xi32> to vector<1x128xf32>
    %c0_22 = arith.constant 0 : index
    %c0_23 = arith.constant 0 : index
    %32 = vector.load %arg7[%c0_22, %c0_23] : memref<1x128xf32, #tpu.memory_space<vmem>>, vector<1x128xf32>
    tpu.vector_store %arg7[%c0_22, %c0_23], %27 {strides = array<i32>} : memref<1x128xf32, #tpu.memory_space<vmem>>, vector<1x128xf32>,
    %c0_24 = arith.constant 0 : index
    %c0_25 = arith.constant 0 : index
    %33 = vector.load %arg6[%c0_24, %c0_25] : memref<1x128xf32, #tpu.memory_space<vmem>>, vector<1x128xf32>
    tpu.vector_store %arg6[%c0_24, %c0_25], %31 {strides = array<i32>} : memref<1x128xf32, #tpu.memory_space<vmem>>, vector<1x128xf32>,
    %34 = arith.index_cast %c0_i32_9 : i32 to index
    %c0_26 = arith.constant 0 : index
    %35 = vector.load %arg4[%34, %c0_26] : memref<8x128xf32, #tpu.memory_space<vmem>>, vector<1x128xf32>
    tpu.vector_store %arg4[%34, %c0_26], %31 {strides = array<i32>} : memref<8x128xf32, #tpu.memory_space<vmem>>, vector<1x128xf32>,
    %c1_i32_27 = arith.constant 1 : i32
    %36 = arith.index_cast %c1_i32_27 : i32 to index
    %c0_28 = arith.constant 0 : index
    %37 = vector.load %arg1[%36, %c0_28] : memref<8x128xf32, #tpu.memory_space<vmem>>, vector<1x128xf32>
    %c0_29 = arith.constant 0 : index
    %c0_30 = arith.constant 0 : index
    %38 = vector.load %arg6[%c0_29, %c0_30] : memref<1x128xf32, #tpu.memory_space<vmem>>, vector<1x128xf32>
    %39 = arith.truncf %38 : vector<1x128xf32> to vector<1x128xbf16>
    %c0_31 = arith.constant 0 : index
    %c0_32 = arith.constant 0 : index
    %40 = vector.load %arg8[%c0_31, %c0_32] : memref<128x128xbf16, #tpu.memory_space<vmem>>, vector<128x128xbf16>
    %cst_33 = arith.constant dense<0.000000e+00> : vector<1x128xf32>
    %41 = tpu.matmul %39, %40, %cst_33 {dimension_numbers = #tpu.dot_dimension_numbers<[1], [0], [0], [1], [0, 0, 1, 1], [], []>} : vector<1x128xbf16>, vector<128x128xbf16>, vector<1x128xf32> -> vector<1x128xf32>
    %42 = arith.addf %37, %41 : vector<1x128xf32>
    %c0_34 = arith.constant 0 : index
    %c0_35 = arith.constant 0 : index
    %43 = vector.load %arg7[%c0_34, %c0_35] : memref<1x128xf32, #tpu.memory_space<vmem>>, vector<1x128xf32>
    %cst_36 = arith.constant 5.000000e-01 : f32
    %44 = vector.broadcast %cst_36 : f32 to vector<1x128xf32>
    %45 = arith.cmpf ogt, %43, %44 : vector<1x128xf32>
    %46 = arith.extui %45 : vector<1x128xi1> to vector<1x128xi32>
    %47 = arith.sitofp %46 : vector<1x128xi32> to vector<1x128xf32>
    %cst_37 = arith.constant 0.899999976 : f32
    %48 = vector.broadcast %cst_37 : f32 to vector<1x128xf32>
    %49 = arith.mulf %48, %43 : vector<1x128xf32>
    %50 = arith.addf %49, %42 : vector<1x128xf32>
    %cst_38 = arith.constant 5.000000e-01 : f32
    %51 = vector.broadcast %cst_38 : f32 to vector<1x128xf32>
    %52 = arith.mulf %47, %51 : vector<1x128xf32>
    %53 = arith.subf %50, %52 : vector<1x128xf32>
    %cst_39 = arith.constant 5.000000e-01 : f32
    %54 = vector.broadcast %cst_39 : f32 to vector<1x128xf32>
    %55 = arith.cmpf ogt, %53, %54 : vector<1x128xf32>
    %56 = arith.extui %55 : vector<1x128xi1> to vector<1x128xi32>
    %57 = arith.sitofp %56 : vector<1x128xi32> to vector<1x128xf32>
    %c0_40 = arith.constant 0 : index
    %c0_41 = arith.constant 0 : index
    %58 = vector.load %arg7[%c0_40, %c0_41] : memref<1x128xf32, #tpu.memory_space<vmem>>, vector<1x128xf32>
    tpu.vector_store %arg7[%c0_40, %c0_41], %53 {strides = array<i32>} : memref<1x128xf32, #tpu.memory_space<vmem>>, vector<1x128xf32>,
    %c0_42 = arith.constant 0 : index
    %c0_43 = arith.constant 0 : index
    %59 = vector.load %arg6[%c0_42, %c0_43] : memref<1x128xf32, #tpu.memory_space<vmem>>, vector<1x128xf32>
    tpu.vector_store %arg6[%c0_42, %c0_43], %57 {strides = array<i32>} : memref<1x128xf32, #tpu.memory_space<vmem>>, vector<1x128xf32>,
    %60 = arith.index_cast %c1_i32_27 : i32 to index
    %c0_44 = arith.constant 0 : index
    %61 = vector.load %arg4[%60, %c0_44] : memref<8x128xf32, #tpu.memory_space<vmem>>, vector<1x128xf32>
    tpu.vector_store %arg4[%60, %c0_44], %57 {strides = array<i32>} : memref<8x128xf32, #tpu.memory_space<vmem>>, vector<1x128xf32>,
    %c2_i32 = arith.constant 2 : i32
    %62 = arith.index_cast %c2_i32 : i32 to index
    %c0_45 = arith.constant 0 : index
    %63 = vector.load %arg1[%62, %c0_45] : memref<8x128xf32, #tpu.memory_space<vmem>>, vector<1x128xf32>
    %c0_46 = arith.constant 0 : index
    %c0_47 = arith.constant 0 : index
    %64 = vector.load %arg6[%c0_46, %c0_47] : memref<1x128xf32, #tpu.memory_space<vmem>>, vector<1x128xf32>
    %65 = arith.truncf %64 : vector<1x128xf32> to vector<1x128xbf16>
    %c0_48 = arith.constant 0 : index
    %c0_49 = arith.constant 0 : index
    %66 = vector.load %arg8[%c0_48, %c0_49] : memref<128x128xbf16, #tpu.memory_space<vmem>>, vector<128x128xbf16>
    %cst_50 = arith.constant dense<0.000000e+00> : vector<1x128xf32>
    %67 = tpu.matmul %65, %66, %cst_50 {dimension_numbers = #tpu.dot_dimension_numbers<[1], [0], [0], [1], [0, 0, 1, 1], [], []>} : vector<1x128xbf16>, vector<128x128xbf16>, vector<1x128xf32> -> vector<1x128xf32>
    %68 = arith.addf %63, %67 : vector<1x128xf32>
    %c0_51 = arith.constant 0 : index
    %c0_52 = arith.constant 0 : index
    %69 = vector.load %arg7[%c0_51, %c0_52] : memref<1x128xf32, #tpu.memory_space<vmem>>, vector<1x128xf32>
    %cst_53 = arith.constant 5.000000e-01 : f32
    %70 = vector.broadcast %cst_53 : f32 to vector<1x128xf32>
    %71 = arith.cmpf ogt, %69, %70 : vector<1x128xf32>
    %72 = arith.extui %71 : vector<1x128xi1> to vector<1x128xi32>
    %73 = arith.sitofp %72 : vector<1x128xi32> to vector<1x128xf32>
    %cst_54 = arith.constant 0.899999976 : f32
    %74 = vector.broadcast %cst_54 : f32 to vector<1x128xf32>
    %75 = arith.mulf %74, %69 : vector<1x128xf32>
    %76 = arith.addf %75, %68 : vector<1x128xf32>
    %cst_55 = arith.constant 5.000000e-01 : f32
    %77 = vector.broadcast %cst_55 : f32 to vector<1x128xf32>
    %78 = arith.mulf %73, %77 : vector<1x128xf32>
    %79 = arith.subf %76, %78 : vector<1x128xf32>
    %cst_56 = arith.constant 5.000000e-01 : f32
    %80 = vector.broadcast %cst_56 : f32 to vector<1x128xf32>
    %81 = arith.cmpf ogt, %79, %80 : vector<1x128xf32>
    %82 = arith.extui %81 : vector<1x128xi1> to vector<1x128xi32>
    %83 = arith.sitofp %82 : vector<1x128xi32> to vector<1x128xf32>
    %c0_57 = arith.constant 0 : index
    %c0_58 = arith.constant 0 : index
    %84 = vector.load %arg7[%c0_57, %c0_58] : memref<1x128xf32, #tpu.memory_space<vmem>>, vector<1x128xf32>
    tpu.vector_store %arg7[%c0_57, %c0_58], %79 {strides = array<i32>} : memref<1x128xf32, #tpu.memory_space<vmem>>, vector<1x128xf32>,
    %c0_59 = arith.constant 0 : index
    %c0_60 = arith.constant 0 : index
    %85 = vector.load %arg6[%c0_59, %c0_60] : memref<1x128xf32, #tpu.memory_space<vmem>>, vector<1x128xf32>
    tpu.vector_store %arg6[%c0_59, %c0_60], %83 {strides = array<i32>} : memref<1x128xf32, #tpu.memory_space<vmem>>, vector<1x128xf32>,
    %86 = arith.index_cast %c2_i32 : i32 to index
    %c0_61 = arith.constant 0 : index
    %87 = vector.load %arg4[%86, %c0_61] : memref<8x128xf32, #tpu.memory_space<vmem>>, vector<1x128xf32>
    tpu.vector_store %arg4[%86, %c0_61], %83 {strides = array<i32>} : memref<8x128xf32, #tpu.memory_space<vmem>>, vector<1x128xf32>,
    %c3_i32 = arith.constant 3 : i32
    %88 = arith.index_cast %c3_i32 : i32 to index
    %c0_62 = arith.constant 0 : index
    %89 = vector.load %arg1[%88, %c0_62] : memref<8x128xf32, #tpu.memory_space<vmem>>, vector<1x128xf32>
    %c0_63 = arith.constant 0 : index
    %c0_64 = arith.constant 0 : index
    %90 = vector.load %arg6[%c0_63, %c0_64] : memref<1x128xf32, #tpu.memory_space<vmem>>, vector<1x128xf32>
    %91 = arith.truncf %90 : vector<1x128xf32> to vector<1x128xbf16>
    %c0_65 = arith.constant 0 : index
    %c0_66 = arith.constant 0 : index
    %92 = vector.load %arg8[%c0_65, %c0_66] : memref<128x128xbf16, #tpu.memory_space<vmem>>, vector<128x128xbf16>
    %cst_67 = arith.constant dense<0.000000e+00> : vector<1x128xf32>
    %93 = tpu.matmul %91, %92, %cst_67 {dimension_numbers = #tpu.dot_dimension_numbers<[1], [0], [0], [1], [0, 0, 1, 1], [], []>} : vector<1x128xbf16>, vector<128x128xbf16>, vector<1x128xf32> -> vector<1x128xf32>
    %94 = arith.addf %89, %93 : vector<1x128xf32>
    %c0_68 = arith.constant 0 : index
    %c0_69 = arith.constant 0 : index
    %95 = vector.load %arg7[%c0_68, %c0_69] : memref<1x128xf32, #tpu.memory_space<vmem>>, vector<1x128xf32>
    %cst_70 = arith.constant 5.000000e-01 : f32
    %96 = vector.broadcast %cst_70 : f32 to vector<1x128xf32>
    %97 = arith.cmpf ogt, %95, %96 : vector<1x128xf32>
    %98 = arith.extui %97 : vector<1x128xi1> to vector<1x128xi32>
    %99 = arith.sitofp %98 : vector<1x128xi32> to vector<1x128xf32>
    %cst_71 = arith.constant 0.899999976 : f32
    %100 = vector.broadcast %cst_71 : f32 to vector<1x128xf32>
    %101 = arith.mulf %100, %95 : vector<1x128xf32>
    %102 = arith.addf %101, %94 : vector<1x128xf32>
    %cst_72 = arith.constant 5.000000e-01 : f32
    %103 = vector.broadcast %cst_72 : f32 to vector<1x128xf32>
    %104 = arith.mulf %99, %103 : vector<1x128xf32>
    %105 = arith.subf %102, %104 : vector<1x128xf32>
    %cst_73 = arith.constant 5.000000e-01 : f32
    %106 = vector.broadcast %cst_73 : f32 to vector<1x128xf32>
    %107 = arith.cmpf ogt, %105, %106 : vector<1x128xf32>
    %108 = arith.extui %107 : vector<1x128xi1> to vector<1x128xi32>
    %109 = arith.sitofp %108 : vector<1x128xi32> to vector<1x128xf32>
    %c0_74 = arith.constant 0 : index
    %c0_75 = arith.constant 0 : index
    %110 = vector.load %arg7[%c0_74, %c0_75] : memref<1x128xf32, #tpu.memory_space<vmem>>, vector<1x128xf32>
    tpu.vector_store %arg7[%c0_74, %c0_75], %105 {strides = array<i32>} : memref<1x128xf32, #tpu.memory_space<vmem>>, vector<1x128xf32>,
    %c0_76 = arith.constant 0 : index
    %c0_77 = arith.constant 0 : index
    %111 = vector.load %arg6[%c0_76, %c0_77] : memref<1x128xf32, #tpu.memory_space<vmem>>, vector<1x128xf32>
    tpu.vector_store %arg6[%c0_76, %c0_77], %109 {strides = array<i32>} : memref<1x128xf32, #tpu.memory_space<vmem>>, vector<1x128xf32>,
    %112 = arith.index_cast %c3_i32 : i32 to index
    %c0_78 = arith.constant 0 : index
    %113 = vector.load %arg4[%112, %c0_78] : memref<8x128xf32, #tpu.memory_space<vmem>>, vector<1x128xf32>
    tpu.vector_store %arg4[%112, %c0_78], %109 {strides = array<i32>} : memref<8x128xf32, #tpu.memory_space<vmem>>, vector<1x128xf32>,
    %c4_i32_79 = arith.constant 4 : i32
    %114 = arith.index_cast %c4_i32_79 : i32 to index
    %c0_80 = arith.constant 0 : index
    %115 = vector.load %arg1[%114, %c0_80] : memref<8x128xf32, #tpu.memory_space<vmem>>, vector<1x128xf32>
    %c0_81 = arith.constant 0 : index
    %c0_82 = arith.constant 0 : index
    %116 = vector.load %arg6[%c0_81, %c0_82] : memref<1x128xf32, #tpu.memory_space<vmem>>, vector<1x128xf32>
    %117 = arith.truncf %116 : vector<1x128xf32> to vector<1x128xbf16>
    %c0_83 = arith.constant 0 : index
    %c0_84 = arith.constant 0 : index
    %118 = vector.load %arg8[%c0_83, %c0_84] : memref<128x128xbf16, #tpu.memory_space<vmem>>, vector<128x128xbf16>
    %cst_85 = arith.constant dense<0.000000e+00> : vector<1x128xf32>
    %119 = tpu.matmul %117, %118, %cst_85 {dimension_numbers = #tpu.dot_dimension_numbers<[1], [0], [0], [1], [0, 0, 1, 1], [], []>} : vector<1x128xbf16>, vector<128x128xbf16>, vector<1x128xf32> -> vector<1x128xf32>
    %120 = arith.addf %115, %119 : vector<1x128xf32>
    %c0_86 = arith.constant 0 : index
    %c0_87 = arith.constant 0 : index
    %121 = vector.load %arg7[%c0_86, %c0_87] : memref<1x128xf32, #tpu.memory_space<vmem>>, vector<1x128xf32>
    %cst_88 = arith.constant 5.000000e-01 : f32
    %122 = vector.broadcast %cst_88 : f32 to vector<1x128xf32>
    %123 = arith.cmpf ogt, %121, %122 : vector<1x128xf32>
    %124 = arith.extui %123 : vector<1x128xi1> to vector<1x128xi32>
    %125 = arith.sitofp %124 : vector<1x128xi32> to vector<1x128xf32>
    %cst_89 = arith.constant 0.899999976 : f32
    %126 = vector.broadcast %cst_89 : f32 to vector<1x128xf32>
    %127 = arith.mulf %126, %121 : vector<1x128xf32>
    %128 = arith.addf %127, %120 : vector<1x128xf32>
    %cst_90 = arith.constant 5.000000e-01 : f32
    %129 = vector.broadcast %cst_90 : f32 to vector<1x128xf32>
    %130 = arith.mulf %125, %129 : vector<1x128xf32>
    %131 = arith.subf %128, %130 : vector<1x128xf32>
    %cst_91 = arith.constant 5.000000e-01 : f32
    %132 = vector.broadcast %cst_91 : f32 to vector<1x128xf32>
    %133 = arith.cmpf ogt, %131, %132 : vector<1x128xf32>
    %134 = arith.extui %133 : vector<1x128xi1> to vector<1x128xi32>
    %135 = arith.sitofp %134 : vector<1x128xi32> to vector<1x128xf32>
    %c0_92 = arith.constant 0 : index
    %c0_93 = arith.constant 0 : index
    %136 = vector.load %arg7[%c0_92, %c0_93] : memref<1x128xf32, #tpu.memory_space<vmem>>, vector<1x128xf32>
    tpu.vector_store %arg7[%c0_92, %c0_93], %131 {strides = array<i32>} : memref<1x128xf32, #tpu.memory_space<vmem>>, vector<1x128xf32>,
    %c0_94 = arith.constant 0 : index
    %c0_95 = arith.constant 0 : index
    %137 = vector.load %arg6[%c0_94, %c0_95] : memref<1x128xf32, #tpu.memory_space<vmem>>, vector<1x128xf32>
    tpu.vector_store %arg6[%c0_94, %c0_95], %135 {strides = array<i32>} : memref<1x128xf32, #tpu.memory_space<vmem>>, vector<1x128xf32>,
    %138 = arith.index_cast %c4_i32_79 : i32 to index
    %c0_96 = arith.constant 0 : index
    %139 = vector.load %arg4[%138, %c0_96] : memref<8x128xf32, #tpu.memory_space<vmem>>, vector<1x128xf32>
    tpu.vector_store %arg4[%138, %c0_96], %135 {strides = array<i32>} : memref<8x128xf32, #tpu.memory_space<vmem>>, vector<1x128xf32>,
    %c5_i32 = arith.constant 5 : i32
    %140 = arith.index_cast %c5_i32 : i32 to index
    %c0_97 = arith.constant 0 : index
    %141 = vector.load %arg1[%140, %c0_97] : memref<8x128xf32, #tpu.memory_space<vmem>>, vector<1x128xf32>
    %c0_98 = arith.constant 0 : index
    %c0_99 = arith.constant 0 : index
    %142 = vector.load %arg6[%c0_98, %c0_99] : memref<1x128xf32, #tpu.memory_space<vmem>>, vector<1x128xf32>
    %143 = arith.truncf %142 : vector<1x128xf32> to vector<1x128xbf16>
    %c0_100 = arith.constant 0 : index
    %c0_101 = arith.constant 0 : index
    %144 = vector.load %arg8[%c0_100, %c0_101] : memref<128x128xbf16, #tpu.memory_space<vmem>>, vector<128x128xbf16>
    %cst_102 = arith.constant dense<0.000000e+00> : vector<1x128xf32>
    %145 = tpu.matmul %143, %144, %cst_102 {dimension_numbers = #tpu.dot_dimension_numbers<[1], [0], [0], [1], [0, 0, 1, 1], [], []>} : vector<1x128xbf16>, vector<128x128xbf16>, vector<1x128xf32> -> vector<1x128xf32>
    %146 = arith.addf %141, %145 : vector<1x128xf32>
    %c0_103 = arith.constant 0 : index
    %c0_104 = arith.constant 0 : index
    %147 = vector.load %arg7[%c0_103, %c0_104] : memref<1x128xf32, #tpu.memory_space<vmem>>, vector<1x128xf32>
    %cst_105 = arith.constant 5.000000e-01 : f32
    %148 = vector.broadcast %cst_105 : f32 to vector<1x128xf32>
    %149 = arith.cmpf ogt, %147, %148 : vector<1x128xf32>
    %150 = arith.extui %149 : vector<1x128xi1> to vector<1x128xi32>
    %151 = arith.sitofp %150 : vector<1x128xi32> to vector<1x128xf32>
    %cst_106 = arith.constant 0.899999976 : f32
    %152 = vector.broadcast %cst_106 : f32 to vector<1x128xf32>
    %153 = arith.mulf %152, %147 : vector<1x128xf32>
    %154 = arith.addf %153, %146 : vector<1x128xf32>
    %cst_107 = arith.constant 5.000000e-01 : f32
    %155 = vector.broadcast %cst_107 : f32 to vector<1x128xf32>
    %156 = arith.mulf %151, %155 : vector<1x128xf32>
    %157 = arith.subf %154, %156 : vector<1x128xf32>
    %cst_108 = arith.constant 5.000000e-01 : f32
    %158 = vector.broadcast %cst_108 : f32 to vector<1x128xf32>
    %159 = arith.cmpf ogt, %157, %158 : vector<1x128xf32>
    %160 = arith.extui %159 : vector<1x128xi1> to vector<1x128xi32>
    %161 = arith.sitofp %160 : vector<1x128xi32> to vector<1x128xf32>
    %c0_109 = arith.constant 0 : index
    %c0_110 = arith.constant 0 : index
    %162 = vector.load %arg7[%c0_109, %c0_110] : memref<1x128xf32, #tpu.memory_space<vmem>>, vector<1x128xf32>
    tpu.vector_store %arg7[%c0_109, %c0_110], %157 {strides = array<i32>} : memref<1x128xf32, #tpu.memory_space<vmem>>, vector<1x128xf32>,
    %c0_111 = arith.constant 0 : index
    %c0_112 = arith.constant 0 : index
    %163 = vector.load %arg6[%c0_111, %c0_112] : memref<1x128xf32, #tpu.memory_space<vmem>>, vector<1x128xf32>
    tpu.vector_store %arg6[%c0_111, %c0_112], %161 {strides = array<i32>} : memref<1x128xf32, #tpu.memory_space<vmem>>, vector<1x128xf32>,
    %164 = arith.index_cast %c5_i32 : i32 to index
    %c0_113 = arith.constant 0 : index
    %165 = vector.load %arg4[%164, %c0_113] : memref<8x128xf32, #tpu.memory_space<vmem>>, vector<1x128xf32>
    tpu.vector_store %arg4[%164, %c0_113], %161 {strides = array<i32>} : memref<8x128xf32, #tpu.memory_space<vmem>>, vector<1x128xf32>,
    %c6_i32 = arith.constant 6 : i32
    %166 = arith.index_cast %c6_i32 : i32 to index
    %c0_114 = arith.constant 0 : index
    %167 = vector.load %arg1[%166, %c0_114] : memref<8x128xf32, #tpu.memory_space<vmem>>, vector<1x128xf32>
    %c0_115 = arith.constant 0 : index
    %c0_116 = arith.constant 0 : index
    %168 = vector.load %arg6[%c0_115, %c0_116] : memref<1x128xf32, #tpu.memory_space<vmem>>, vector<1x128xf32>
    %169 = arith.truncf %168 : vector<1x128xf32> to vector<1x128xbf16>
    %c0_117 = arith.constant 0 : index
    %c0_118 = arith.constant 0 : index
    %170 = vector.load %arg8[%c0_117, %c0_118] : memref<128x128xbf16, #tpu.memory_space<vmem>>, vector<128x128xbf16>
    %cst_119 = arith.constant dense<0.000000e+00> : vector<1x128xf32>
    %171 = tpu.matmul %169, %170, %cst_119 {dimension_numbers = #tpu.dot_dimension_numbers<[1], [0], [0], [1], [0, 0, 1, 1], [], []>} : vector<1x128xbf16>, vector<128x128xbf16>, vector<1x128xf32> -> vector<1x128xf32>
    %172 = arith.addf %167, %171 : vector<1x128xf32>
    %c0_120 = arith.constant 0 : index
    %c0_121 = arith.constant 0 : index
    %173 = vector.load %arg7[%c0_120, %c0_121] : memref<1x128xf32, #tpu.memory_space<vmem>>, vector<1x128xf32>
    %cst_122 = arith.constant 5.000000e-01 : f32
    %174 = vector.broadcast %cst_122 : f32 to vector<1x128xf32>
    %175 = arith.cmpf ogt, %173, %174 : vector<1x128xf32>
    %176 = arith.extui %175 : vector<1x128xi1> to vector<1x128xi32>
    %177 = arith.sitofp %176 : vector<1x128xi32> to vector<1x128xf32>
    %cst_123 = arith.constant 0.899999976 : f32
    %178 = vector.broadcast %cst_123 : f32 to vector<1x128xf32>
    %179 = arith.mulf %178, %173 : vector<1x128xf32>
    %180 = arith.addf %179, %172 : vector<1x128xf32>
    %cst_124 = arith.constant 5.000000e-01 : f32
    %181 = vector.broadcast %cst_124 : f32 to vector<1x128xf32>
    %182 = arith.mulf %177, %181 : vector<1x128xf32>
    %183 = arith.subf %180, %182 : vector<1x128xf32>
    %cst_125 = arith.constant 5.000000e-01 : f32
    %184 = vector.broadcast %cst_125 : f32 to vector<1x128xf32>
    %185 = arith.cmpf ogt, %183, %184 : vector<1x128xf32>
    %186 = arith.extui %185 : vector<1x128xi1> to vector<1x128xi32>
    %187 = arith.sitofp %186 : vector<1x128xi32> to vector<1x128xf32>
    %c0_126 = arith.constant 0 : index
    %c0_127 = arith.constant 0 : index
    %188 = vector.load %arg7[%c0_126, %c0_127] : memref<1x128xf32, #tpu.memory_space<vmem>>, vector<1x128xf32>
    tpu.vector_store %arg7[%c0_126, %c0_127], %183 {strides = array<i32>} : memref<1x128xf32, #tpu.memory_space<vmem>>, vector<1x128xf32>,
    %c0_128 = arith.constant 0 : index
    %c0_129 = arith.constant 0 : index
    %189 = vector.load %arg6[%c0_128, %c0_129] : memref<1x128xf32, #tpu.memory_space<vmem>>, vector<1x128xf32>
    tpu.vector_store %arg6[%c0_128, %c0_129], %187 {strides = array<i32>} : memref<1x128xf32, #tpu.memory_space<vmem>>, vector<1x128xf32>,
    %190 = arith.index_cast %c6_i32 : i32 to index
    %c0_130 = arith.constant 0 : index
    %191 = vector.load %arg4[%190, %c0_130] : memref<8x128xf32, #tpu.memory_space<vmem>>, vector<1x128xf32>
    tpu.vector_store %arg4[%190, %c0_130], %187 {strides = array<i32>} : memref<8x128xf32, #tpu.memory_space<vmem>>, vector<1x128xf32>,
    %c7_i32 = arith.constant 7 : i32
    %192 = arith.index_cast %c7_i32 : i32 to index
    %c0_131 = arith.constant 0 : index
    %193 = vector.load %arg1[%192, %c0_131] : memref<8x128xf32, #tpu.memory_space<vmem>>, vector<1x128xf32>
    %c0_132 = arith.constant 0 : index
    %c0_133 = arith.constant 0 : index
    %194 = vector.load %arg6[%c0_132, %c0_133] : memref<1x128xf32, #tpu.memory_space<vmem>>, vector<1x128xf32>
    %195 = arith.truncf %194 : vector<1x128xf32> to vector<1x128xbf16>
    %c0_134 = arith.constant 0 : index
    %c0_135 = arith.constant 0 : index
    %196 = vector.load %arg8[%c0_134, %c0_135] : memref<128x128xbf16, #tpu.memory_space<vmem>>, vector<128x128xbf16>
    %cst_136 = arith.constant dense<0.000000e+00> : vector<1x128xf32>
    %197 = tpu.matmul %195, %196, %cst_136 {dimension_numbers = #tpu.dot_dimension_numbers<[1], [0], [0], [1], [0, 0, 1, 1], [], []>} : vector<1x128xbf16>, vector<128x128xbf16>, vector<1x128xf32> -> vector<1x128xf32>
    %198 = arith.addf %193, %197 : vector<1x128xf32>
    %c0_137 = arith.constant 0 : index
    %c0_138 = arith.constant 0 : index
    %199 = vector.load %arg7[%c0_137, %c0_138] : memref<1x128xf32, #tpu.memory_space<vmem>>, vector<1x128xf32>
    %cst_139 = arith.constant 5.000000e-01 : f32
    %200 = vector.broadcast %cst_139 : f32 to vector<1x128xf32>
    %201 = arith.cmpf ogt, %199, %200 : vector<1x128xf32>
    %202 = arith.extui %201 : vector<1x128xi1> to vector<1x128xi32>
    %203 = arith.sitofp %202 : vector<1x128xi32> to vector<1x128xf32>
    %cst_140 = arith.constant 0.899999976 : f32
    %204 = vector.broadcast %cst_140 : f32 to vector<1x128xf32>
    %205 = arith.mulf %204, %199 : vector<1x128xf32>
    %206 = arith.addf %205, %198 : vector<1x128xf32>
    %cst_141 = arith.constant 5.000000e-01 : f32
    %207 = vector.broadcast %cst_141 : f32 to vector<1x128xf32>
    %208 = arith.mulf %203, %207 : vector<1x128xf32>
    %209 = arith.subf %206, %208 : vector<1x128xf32>
    %cst_142 = arith.constant 5.000000e-01 : f32
    %210 = vector.broadcast %cst_142 : f32 to vector<1x128xf32>
    %211 = arith.cmpf ogt, %209, %210 : vector<1x128xf32>
    %212 = arith.extui %211 : vector<1x128xi1> to vector<1x128xi32>
    %213 = arith.sitofp %212 : vector<1x128xi32> to vector<1x128xf32>
    %c0_143 = arith.constant 0 : index
    %c0_144 = arith.constant 0 : index
    %214 = vector.load %arg7[%c0_143, %c0_144] : memref<1x128xf32, #tpu.memory_space<vmem>>, vector<1x128xf32>
    tpu.vector_store %arg7[%c0_143, %c0_144], %209 {strides = array<i32>} : memref<1x128xf32, #tpu.memory_space<vmem>>, vector<1x128xf32>,
    %c0_145 = arith.constant 0 : index
    %c0_146 = arith.constant 0 : index
    %215 = vector.load %arg6[%c0_145, %c0_146] : memref<1x128xf32, #tpu.memory_space<vmem>>, vector<1x128xf32>
    tpu.vector_store %arg6[%c0_145, %c0_146], %213 {strides = array<i32>} : memref<1x128xf32, #tpu.memory_space<vmem>>, vector<1x128xf32>,
    %216 = arith.index_cast %c7_i32 : i32 to index
    %c0_147 = arith.constant 0 : index
    %217 = vector.load %arg4[%216, %c0_147] : memref<8x128xf32, #tpu.memory_space<vmem>>, vector<1x128xf32>
    tpu.vector_store %arg4[%216, %c0_147], %213 {strides = array<i32>} : memref<8x128xf32, #tpu.memory_space<vmem>>, vector<1x128xf32>,
    %c8_i32 = arith.constant 8 : i32
    %c0_148 = arith.constant 0 : index
    %c0_149 = arith.constant 0 : index
    %218 = vector.load %arg7[%c0_148, %c0_149] : memref<1x128xf32, #tpu.memory_space<vmem>>, vector<1x128xf32>
    %c0_150 = arith.constant 0 : index
    %c0_151 = arith.constant 0 : index
    %219 = vector.load %arg5[%c0_150, %c0_151] : memref<1x128xf32, #tpu.memory_space<vmem>>, vector<1x128xf32>
    tpu.vector_store %arg5[%c0_150, %c0_151], %218 {strides = array<i32>} : memref<1x128xf32, #tpu.memory_space<vmem>>, vector<1x128xf32>,
    return
  }
  func.func @transform_0(%arg0: i32) -> (i32, i32) {
    %c0_i32 = arith.constant 0 : i32
    %c0_i32_0 = arith.constant 0 : i32
    %c0_i32_1 = arith.constant 0 : i32
    return %c0_i32, %c0_i32_0 : i32, i32
  }
  func.func @transform_2(%arg0: i32) -> (i32, i32) {
    %c0_i32 = arith.constant 0 : i32
    %c0_i32_0 = arith.constant 0 : i32
    %c0_i32_1 = arith.constant 0 : i32
    return %c0_i32, %c0_i32_0 : i32, i32
  }
  func.func @transform_3(%arg0: i32) -> (i32, i32) {
    %c0_i32 = arith.constant 0 : i32
    %c0_i32_0 = arith.constant 0 : i32
    %c0_i32_1 = arith.constant 0 : i32
    return %c0_i32, %c0_i32_0 : i32, i32
  }
  func.func @transform_4(%arg0: i32) -> (i32, i32) {
    %c0_i32 = arith.constant 0 : i32
    %c0_i32_0 = arith.constant 0 : i32
    %c0_i32_1 = arith.constant 0 : i32
    return %c0_i32, %c0_i32_0 : i32, i32
  }
}

</mosaic_0001>

<bundles_post_ra>
// kernel: tpu_custom_call.1
= control target key start
LH: loop header
LB: loop body
LE: loop exit
PB: predicated region body
PF: predicated region fallthrough
CT: control target
= control target key end

     0   :  { %10 = vsyncpa [#allocation7], 0  ;;  %s2208_s0 = inlined_call_operand.hbm [shape: f32[8,128], index: 0, kind: input, shape index: {}]   ;;  %s2209_s1 = inlined_call_operand.hbm [shape: bf16[128,128], index: 1, kind: input, shape index: {}]   ;;  %s2210_s2 = inlined_call_operand.vmem [shape: f32[1,128], index: 2, kind: input, shape index: {}]   ;;  %s2211_s3 = inlined_call_operand.hbm [shape: f32[8,128], index: 3, kind: output, shape index: {0}]   ;;  %s2212_s4 = inlined_call_operand.hbm [shape: f32[1,128], index: 4, kind: output, shape index: {1}]  }
   0x1   :  { %11 = vsyncpa [#allocation8], 0 }
   0x2   :  { %12 = vsyncpa [#allocation11], 0  ;;  %s1763_s15 = smov [#allocation6]   ;;  %s1659_s19 = scalar_lea.hbm %s2208_s0, 128 }
   0x3   :  { %s19_s16 = sshll.u32 %s1763_s15, 4  ;;  %p1660_p0 = scmp.ne.s32.totalorder %s2208_s0, %s1659_s19  ;;  %s20_s16 = int_to_ptr.vmem [resolvable:$true] %s19_s16 }
   0x4   :  { %p1663_p1 = scmp.lt.u32.totalorder %s1659_s19, %s2208_s0 }
   0x6   :  { %p1665_p2 = pnand %p1663_p1, %p1660_p0 }
   0x8   :  { %1668 = shalt.err (!%p1665_p2)
}
   0x9   :  { %s1669_s24 = scalar_lea.vmem %s20_s16, 128  ;;  %p1674_p4 = scmp.lt.s32.totalorder %s20_s16, %s20_s16 }
   0xa   :  { %p1670_p3 = scmp.ne.s32.totalorder %s20_s16, %s1669_s24  ;;  %p1675_p5 = scmp.lt.s32.totalorder %s1669_s24, %s1669_s24 }
   0xc   :  { %p1676_p6 = por %p1675_p5, %p1674_p4 }
   0xe   :  { %p1677_p7 = pnand %p1676_p6, %p1670_p3 }
  0x10   :  { %1680 = shalt.err (!%p1677_p7)
}
  0x11   :  { %22 = dma.hbm_to_vmem [thread:$0]  %s2208_s0, 128, %s20_s16, [#allocation7]  }
  0x12   :  { %1751 = dma.done.wait [#allocation7], 128  }
  0x13   :  { %1752 = vsyncadd [#allocation7], 4294967168  ;;  %s1764_s27 = smov [#allocation4]   ;;  %s1681_s5 = scalar_lea.hbm %s2209_s1, 1024 }
  0x14   :  { %s36_s28 = sshll.u32 %s1764_s27, 4  ;;  %p1682_p8 = scmp.ne.s32.totalorder %s2209_s1, %s1681_s5  ;;  %s37_s28 = int_to_ptr.vmem [resolvable:$true] %s36_s28 }
  0x15   :  { %p1685_p9 = scmp.lt.u32.totalorder %s1681_s5, %s2209_s1 }
  0x17   :  { %p1687_p10 = pnand %p1685_p9, %p1682_p8 }
  0x19   :  { %1690 = shalt.err (!%p1687_p10)  }
  0x1a   :  { %s1691_s0 = scalar_lea.vmem %s37_s28, 1024  ;;  %p1696_p12 = scmp.lt.s32.totalorder %s37_s28, %s37_s28 }
  0x1b   :  { %p1692_p11 = scmp.ne.s32.totalorder %s37_s28, %s1691_s0  ;;  %p1697_p13 = scmp.lt.s32.totalorder %s1691_s0, %s1691_s0 }
  0x1d   :  { %p1698_p0 = por %p1697_p13, %p1696_p12 }
  0x1f   :  { %p1699_p1 = pnand %p1698_p0, %p1692_p11 }
  0x21   :  { %1702 = shalt.err (!%p1699_p1)  }
  0x22   :  { %39 = dma.hbm_to_vmem [thread:$0]  %s2209_s1, 1024, %s37_s28, [#allocation5]  ;;  %v40_v0 = vld [vmem:[#allocation6] sm:$0x1]  ;;  %v44_v1 = vld [vmem:[%s2210_s2] sm:$0x1] }
  0x23   :  { %vm41_vm0 = vcmp.eq.f32.partialorder %v40_v0, 1.0  ;;  %45 = vst [vmem:[#allocation3] sm:$0x1] %v44_v1  ;;  %v1765_v2 = vmov 0.0  }
  0x24   :  { %v42_v3 = vsel %vm41_vm0, 1.0, %v1765_v2 }
  0x25   :  { %43 = vst [vmem:[#allocation2] sm:$0x1] %v42_v3 }
  0x26   :  { %1753 = dma.done.wait [#allocation5], 1024 }
  0x27   :  { %1754 = vsyncadd [#allocation5], 4294966272  ;;  %s1824_s14 = smov 0  }
  0x28 LB: > { %v1829_v4 = vld [vmem:[#allocation4] sm:$0xff]  ;;  %v1766_v5 = vmov 0.0   ;;  %vm1767_vm1 = vmmov 0   ;;  %v1837_v6 = vld [vmem:[#allocation4 + $0x8] sm:$0xff]  ;;  %v1845_v7 = vld [vmem:[#allocation4 + $0x10] sm:$0xff]  ;;  %s55_s14 = sadd.s32 1, %s1761_s14   ;;  %s1761_s14 = sphi %s1824_s14, %s55_s14  }
  0x29   : > { %1323 = vmatprep.subr.bf16.mxu0 %v1766_v5  ;;  %1339 = vmatprep.mubr.msk.bf16.mxu0 %vm1767_vm1, %v1766_v5  ;;  %v1851_v8 = vld [vmem:[#allocation4 + $0x18] sm:$0xff]  ;;  %v1857_v9 = vld [vmem:[#allocation4 + $0x20] sm:$0xff]  ;;  %v1863_v10 = vld [vmem:[#allocation4 + $0x28] sm:$0xff]  ;;  %p52_p2 = scmp.ge.s32.totalorder %s55_s14, 4  }
  0x2a   : > { %1324 = vmatpush3.bf16.msra.mxu0 %v1829_v4  ;;  %1343 = vmatprep.subr.bf16.mxu1 %v1766_v5  ;;  %v1869_v11 = vld [vmem:[#allocation4 + $0x30] sm:$0xff]  ;;  %v1875_v13 = vld [vmem:[#allocation4 + $0x38] sm:$0xff]  ;;  %v56_v16 = vld [vmem:[#allocation6] sm:$0x1]  ;;  %s1769_s1 = smov (%p52_p2), [#allocation9]   ;;  %s1770_s15 = smov (%p52_p2), [#allocation10]  }
  0x2b   : > { %1325 = vmatprep.subr.bf16.mxu0 %v1766_v5  ;;  %1344 = vmatpush3.bf16.msra.mxu1 %v1829_v4  ;;  %v108_v15 = vld [vmem:[#allocation3] sm:$0x1]  ;;  %v121_v31 = vld [vmem:[#allocation6 + $0x1] sm:$0x1]  ;;  %v186_v46 = vld [vmem:[#allocation6 + $0x2] sm:$0x1] }
  0x2c   : > { %1345 = vmatprep.subr.bf16.mxu1 %v1766_v5  ;;  %1359 = vmatprep.mubr.msk.bf16.mxu1 %vm1767_vm1, %v1766_v5  ;;  %v57_v12 = vld [vmem:[#allocation2] sm:$0x1]  ;;  %vm109_vm2 = vcmp.gt.f32.partialorder %v108_v15, 0.5  ;;  %v112_v18 = vmul.f32 0.9, %v108_v15  ;;  %s1112_s2 = sshll.u32 (%p52_p2), %s1769_s1, 4  ;;  %s1113_s2 = int_to_ptr.vmem [resolvable:$true] %s1112_s2 }
  0x2d   : > { %v58_v14 = vpack.c.bf16 %v57_v12, %v57_v12  ;;  %v1146_v17 = vsel %vm109_vm2, 1.0, %v1766_v5  ;;  %v251_v61 = vld [vmem:[#allocation6 + $0x3] sm:$0x1]  ;;  %vm1768_vm2 = vmmov (%p52_p2), 0   ;;  %s1122_s16 = sshll.u32 (%p52_p2), %s1770_s15, 4  ;;  %s1703_s17 = scalar_lea.vmem (%p52_p2), %s1113_s2, 128  ;;  %s1123_s16 = int_to_ptr.vmem [resolvable:$true] %s1122_s16 }
  0x2e   : > { %1326 = vmatpush3.bf16.msra.mxu0 %v1837_v6  ;;  %v114_v21 = vmul.f32 0.5, %v1146_v17  ;;  %p1704_p3 = scmp.ne.s32.totalorder (%p52_p2), %s1113_s2, %s1703_s17  ;;  %p1708_p4 = scmp.lt.s32.totalorder (%p52_p2), %s1113_s2, %s1113_s2 }
  0x2f   : > { %1327 = vmatprep.subr.bf16.mxu0 %v1766_v5  ;;  %1346 = vmatpush3.bf16.msra.mxu1 %v1837_v6  ;;  %p1709_p5 = scmp.lt.s32.totalorder (%p52_p2), %s1703_s17, %s1703_s17 }
  0x30   : > { %1347 = vmatprep.subr.bf16.mxu1 %v1766_v5 }
  0x31   :  { %p1710_p6 = por (%p52_p2), %p1709_p5, %p1708_p4 }
  0x32   : > { %1328 = vmatpush3.bf16.msra.mxu0 %v1845_v7 }
  0x33   : > { %1329 = vmatprep.subr.bf16.mxu0 %v1766_v5  ;;  %1348 = vmatpush3.bf16.msra.mxu1 %v1845_v7  ;;  %p1711_p7 = pnand (%p52_p2), %p1710_p6, %p1704_p3 }
  0x34   : > { %1349 = vmatprep.subr.bf16.mxu1 %v1766_v5 }
  0x36   : > { %1330 = vmatpush3.bf16.msra.mxu0 %v1851_v8 }
  0x37   : > { %1331 = vmatprep.subr.bf16.mxu0 %v1766_v5  ;;  %1350 = vmatpush3.bf16.msra.mxu1 %v1851_v8 }
  0x38   : > { %1351 = vmatprep.subr.bf16.mxu1 %v1766_v5 }
  0x3a   : > { %1332 = vmatpush3.bf16.msra.mxu0 %v1857_v9 }
  0x3b   : > { %1333 = vmatprep.subr.bf16.mxu0 %v1766_v5  ;;  %1352 = vmatpush3.bf16.msra.mxu1 %v1857_v9 }
  0x3c   : > { %1353 = vmatprep.subr.bf16.mxu1 %v1766_v5 }
  0x3e   : > { %1334 = vmatpush3.bf16.msra.mxu0 %v1863_v10 }
  0x3f   : > { %1335 = vmatprep.subr.bf16.mxu0 %v1766_v5  ;;  %1354 = vmatpush3.bf16.msra.mxu1 %v1863_v10 }
  0x40   : > { %1355 = vmatprep.subr.bf16.mxu1 %v1766_v5 }
  0x42   : > { %1336 = vmatpush3.bf16.msra.mxu0 %v1869_v11 }
  0x43   : > { %1337 = vmatprep.subr.bf16.mxu0 %v1766_v5  ;;  %1356 = vmatpush3.bf16.msra.mxu1 %v1869_v11 }
  0x44   : > { %1357 = vmatprep.subr.bf16.mxu1 %v1766_v5 }
  0x46   : > { %1338 = vmatpush3.bf16.msra.mxu0 %v1875_v13 }
  0x47   : > { %1358 = vmatpush3.bf16.msra.mxu1 %v1875_v13  ;;  %1363 = vmatprep.subr.bf16.mxu0 %v1766_v5 }
  0x48   : > { %1383 = vmatprep.subr.bf16.mxu1 %v1766_v5 }
  0x49   : > { %1340 = vmatmul.mubr.bf16.vlgmr.msra.gmra.mrb[0].mxu0 %v58_v14 }
  0x4a   : > { %1364 = vmatpush3.bf16.msra.mxu0 %v1829_v4  ;;  %1379 = vmatprep.mubr.msk.bf16.mxu0 %vm1767_vm1, %v1766_v5 }
  0x4b   : > { %1365 = vmatprep.subr.bf16.mxu0 %v1766_v5 }
  0x4e   : > { %1366 = vmatpush3.bf16.msra.mxu0 %v1837_v6 }
  0x4f   : > { %1367 = vmatprep.subr.bf16.mxu0 %v1766_v5 }
  0x52   : > { %1368 = vmatpush3.bf16.msra.mxu0 %v1845_v7 }
  0x53   : > { %1369 = vmatprep.subr.bf16.mxu0 %v1766_v5 }
  0x56   : > { %1370 = vmatpush3.bf16.msra.mxu0 %v1851_v8 }
  0x57   : > { %1371 = vmatprep.subr.bf16.mxu0 %v1766_v5 }
  0x5a   : > { %1372 = vmatpush3.bf16.msra.mxu0 %v1857_v9 }
  0x5b   : > { %1373 = vmatprep.subr.bf16.mxu0 %v1766_v5 }
  0x5e   : > { %1374 = vmatpush3.bf16.msra.mxu0 %v1863_v10 }
  0x5f   : > { %1375 = vmatprep.subr.bf16.mxu0 %v1766_v5 }
  0x62   : > { %1376 = vmatpush3.bf16.msra.mxu0 %v1869_v11 }
  0x63   : > { %1377 = vmatprep.subr.bf16.mxu0 %v1766_v5 }
  0x66   : > { %1378 = vmatpush3.bf16.msra.mxu0 %v1875_v13 }
  0x67   : > { %1403 = vmatprep.subr.bf16.mxu0 %v1766_v5 }
 0x11c   : > { %v101_v19 = vpop.f32.mrb[0].mxu0 }
 0x11d   : > { %v107_v20 = vadd.f32 %v101_v19, %v56_v16  ;;  %v1341_v22 = vpop.f32.mrb[1].mxu0 }
 0x11e   : > { %v104_v23 = vpop.f32.mrb[2].mxu0  ;;  %v316_v22 = vld [vmem:[#allocation6 + $0x4] sm:$0x1] }
 0x11f   : > { %v113_v24 = vadd.f32 %v112_v18, %v107_v20  ;;  %v1342_v25 = vpop.f32.mrb[3].mxu0 }
 0x121   : > { %v115_v26 = vsub.f32 %v113_v24, %v114_v21 }
 0x123   : > { %vm116_vm3 = vcmp.gt.f32.partialorder %v115_v26, 0.5  ;;  %119 = vst [vmem:[#allocation3] sm:$0x1] %v115_v26 }
 0x124   : > { %v1147_v27 = vsel %vm116_vm3, 1.0, %v1766_v5 }
 0x125   : > { %120 = vst [vmem:[#allocation2] sm:$0x1] %v1147_v27 }
 0x12a   : > { %v173_v30 = vld [vmem:[#allocation3] sm:$0x1] }
 0x12b   : > { %vm174_vm4 = vcmp.gt.f32.partialorder %v173_v30, 0.5  ;;  %v177_v35 = vmul.f32 0.9, %v173_v30 }
 0x12c   : > { %v122_v28 = vld [vmem:[#allocation2] sm:$0x1]  ;;  %v1148_v33 = vsel %vm174_vm4, 1.0, %v1766_v5 }
 0x12d   : > { %v123_v29 = vpack.c.bf16 %v122_v28, %v122_v28  ;;  %v179_v39 = vmul.f32 0.5, %v1148_v33 }
 0x12f   : > { %1360 = vmatmul.mubr.bf16.vlgmr.msra.gmra.mrb[0].mxu1 %v123_v29 }
 0x130   : > { %1384 = vmatpush3.bf16.msra.mxu1 %v1829_v4  ;;  %1399 = vmatprep.mubr.msk.bf16.mxu1 %vm1767_vm1, %v1766_v5 }
 0x131   : > { %1385 = vmatprep.subr.bf16.mxu1 %v1766_v5 }
 0x134   : > { %1386 = vmatpush3.bf16.msra.mxu1 %v1837_v6 }
 0x135   : > { %1387 = vmatprep.subr.bf16.mxu1 %v1766_v5 }
 0x138   : > { %1388 = vmatpush3.bf16.msra.mxu1 %v1845_v7 }
 0x139   : > { %1389 = vmatprep.subr.bf16.mxu1 %v1766_v5 }
 0x13c   : > { %1390 = vmatpush3.bf16.msra.mxu1 %v1851_v8 }
 0x13d   : > { %1391 = vmatprep.subr.bf16.mxu1 %v1766_v5 }
 0x140   : > { %1392 = vmatpush3.bf16.msra.mxu1 %v1857_v9 }
 0x141   : > { %1393 = vmatprep.subr.bf16.mxu1 %v1766_v5 }
 0x144   : > { %1394 = vmatpush3.bf16.msra.mxu1 %v1863_v10 }
 0x145   : > { %1395 = vmatprep.subr.bf16.mxu1 %v1766_v5 }
 0x148   : > { %1396 = vmatpush3.bf16.msra.mxu1 %v1869_v11 }
 0x149   : > { %1397 = vmatprep.subr.bf16.mxu1 %v1766_v5 }
 0x14c   : > { %1398 = vmatpush3.bf16.msra.mxu1 %v1875_v13 }
 0x14d   : > { %1423 = vmatprep.subr.bf16.mxu1 %v1766_v5 }
 0x202   : > { %v166_v32 = vpop.f32.mrb[0].mxu1 }
 0x203   : > { %v172_v34 = vadd.f32 %v166_v32, %v121_v31  ;;  %v1361_v36 = vpop.f32.mrb[1].mxu1 }
 0x204   : > { %v169_v37 = vpop.f32.mrb[2].mxu1 }
 0x205   : > { %v178_v38 = vadd.f32 %v177_v35, %v172_v34  ;;  %v1362_v40 = vpop.f32.mrb[3].mxu1 }
 0x207   : > { %v180_v41 = vsub.f32 %v178_v38, %v179_v39 }
 0x209   : > { %vm181_vm5 = vcmp.gt.f32.partialorder %v180_v41, 0.5  ;;  %184 = vst [vmem:[#allocation3] sm:$0x1] %v180_v41 }
 0x20a   : > { %v1149_v42 = vsel %vm181_vm5, 1.0, %v1766_v5 }
 0x20b   : > { %185 = vst [vmem:[#allocation2] sm:$0x1] %v1149_v42 }
 0x210   : > { %v238_v45 = vld [vmem:[#allocation3] sm:$0x1] }
 0x211   : > { %vm239_vm6 = vcmp.gt.f32.partialorder %v238_v45, 0.5  ;;  %v242_v50 = vmul.f32 0.9, %v238_v45 }
 0x212   : > { %v187_v43 = vld [vmem:[#allocation2] sm:$0x1]  ;;  %v1150_v48 = vsel %vm239_vm6, 1.0, %v1766_v5 }
 0x213   : > { %v188_v44 = vpack.c.bf16 %v187_v43, %v187_v43  ;;  %v244_v54 = vmul.f32 0.5, %v1150_v48 }
 0x215   : > { %1380 = vmatmul.mubr.bf16.vlgmr.msra.gmra.mrb[4].mxu0 %v188_v44  ;;  %v446_v44 = vld [vmem:[#allocation6 + $0x6] sm:$0x1] }
 0x216   : > { %1404 = vmatpush3.bf16.msra.mxu0 %v1829_v4  ;;  %1419 = vmatprep.mubr.msk.bf16.mxu0 %vm1767_vm1, %v1766_v5 }
 0x217   : > { %1405 = vmatprep.subr.bf16.mxu0 %v1766_v5 }
 0x21a   : > { %1406 = vmatpush3.bf16.msra.mxu0 %v1837_v6 }
 0x21b   : > { %1407 = vmatprep.subr.bf16.mxu0 %v1766_v5 }
 0x21e   : > { %1408 = vmatpush3.bf16.msra.mxu0 %v1845_v7 }
 0x21f   : > { %1409 = vmatprep.subr.bf16.mxu0 %v1766_v5 }
 0x222   : > { %1410 = vmatpush3.bf16.msra.mxu0 %v1851_v8 }
 0x223   : > { %1411 = vmatprep.subr.bf16.mxu0 %v1766_v5 }
 0x226   : > { %1412 = vmatpush3.bf16.msra.mxu0 %v1857_v9 }
 0x227   : > { %1413 = vmatprep.subr.bf16.mxu0 %v1766_v5 }
 0x22a   : > { %1414 = vmatpush3.bf16.msra.mxu0 %v1863_v10 }
 0x22b   : > { %1415 = vmatprep.subr.bf16.mxu0 %v1766_v5 }
 0x22e   : > { %1416 = vmatpush3.bf16.msra.mxu0 %v1869_v11 }
 0x22f   : > { %1417 = vmatprep.subr.bf16.mxu0 %v1766_v5 }
 0x232   : > { %1418 = vmatpush3.bf16.msra.mxu0 %v1875_v13 }
 0x233   : > { %1443 = vmatprep.subr.bf16.mxu0 %v1766_v5 }
 0x2e8   : > { %v231_v47 = vpop.f32.mrb[4].mxu0 }
 0x2e9   : > { %v237_v49 = vadd.f32 %v231_v47, %v186_v46  ;;  %v1381_v51 = vpop.f32.mrb[5].mxu0 }
 0x2ea   : > { %v234_v52 = vpop.f32.mrb[6].mxu0 }
 0x2eb   : > { %v243_v53 = vadd.f32 %v242_v50, %v237_v49  ;;  %v1382_v55 = vpop.f32.mrb[7].mxu0 }
 0x2ed   : > { %v245_v56 = vsub.f32 %v243_v53, %v244_v54 }
 0x2ef   : > { %vm246_vm7 = vcmp.gt.f32.partialorder %v245_v56, 0.5  ;;  %249 = vst [vmem:[#allocation3] sm:$0x1] %v245_v56 }
 0x2f0   : > { %v1151_v57 = vsel %vm246_vm7, 1.0, %v1766_v5 }
 0x2f1   : > { %250 = vst [vmem:[#allocation2] sm:$0x1] %v1151_v57 }
 0x2f6   : > { %v303_v60 = vld [vmem:[#allocation3] sm:$0x1] }
 0x2f7   : > { %vm304_vm8 = vcmp.gt.f32.partialorder %v303_v60, 0.5  ;;  %v307_v1 = vmul.f32 0.9, %v303_v60 }
 0x2f8   : > { %v252_v58 = vld [vmem:[#allocation2] sm:$0x1]  ;;  %v1152_v63 = vsel %vm304_vm8, 1.0, %v1766_v5 }
 0x2f9   : > { %v253_v59 = vpack.c.bf16 %v252_v58, %v252_v58  ;;  %v309_v15 = vmul.f32 0.5, %v1152_v63 }
 0x2fb   : > { %1400 = vmatmul.mubr.bf16.vlgmr.msra.gmra.mrb[4].mxu1 %v253_v59  ;;  %v511_v59 = vld [vmem:[#allocation6 + $0x7] sm:$0x1] }
 0x2fc   : > { %1424 = vmatpush3.bf16.msra.mxu1 %v1829_v4  ;;  %1439 = vmatprep.mubr.msk.bf16.mxu1 %vm1767_vm1, %v1766_v5 }
 0x2fd   : > { %1425 = vmatprep.subr.bf16.mxu1 %v1766_v5 }
 0x300   : > { %1426 = vmatpush3.bf16.msra.mxu1 %v1837_v6 }
 0x301   : > { %1427 = vmatprep.subr.bf16.mxu1 %v1766_v5 }
 0x304   : > { %1428 = vmatpush3.bf16.msra.mxu1 %v1845_v7 }
 0x305   : > { %1429 = vmatprep.subr.bf16.mxu1 %v1766_v5 }
 0x308   : > { %1430 = vmatpush3.bf16.msra.mxu1 %v1851_v8 }
 0x309   : > { %1431 = vmatprep.subr.bf16.mxu1 %v1766_v5 }
 0x30c   : > { %1432 = vmatpush3.bf16.msra.mxu1 %v1857_v9 }
 0x30d   : > { %1433 = vmatprep.subr.bf16.mxu1 %v1766_v5 }
 0x310   : > { %1434 = vmatpush3.bf16.msra.mxu1 %v1863_v10 }
 0x311   : > { %1435 = vmatprep.subr.bf16.mxu1 %v1766_v5 }
 0x314   : > { %1436 = vmatpush3.bf16.msra.mxu1 %v1869_v11 }
 0x315   : > { %1437 = vmatprep.subr.bf16.mxu1 %v1766_v5 }
 0x318   : > { %1438 = vmatpush3.bf16.msra.mxu1 %v1875_v13 }
 0x319   : > { %1463 = vmatprep.subr.bf16.mxu1 %v1766_v5 }
 0x3ce   : > { %v296_v62 = vpop.f32.mrb[4].mxu1 }
 0x3cf   : > { %v302_v0 = vadd.f32 %v296_v62, %v251_v61  ;;  %v1401_v3 = vpop.f32.mrb[5].mxu1 }
 0x3d0   : > { %v299_v12 = vpop.f32.mrb[6].mxu1 }
 0x3d1   : > { %v308_v14 = vadd.f32 %v307_v1, %v302_v0  ;;  %v1402_v16 = vpop.f32.mrb[7].mxu1 }
 0x3d3   : > { %v310_v17 = vsub.f32 %v308_v14, %v309_v15 }
 0x3d5   : > { %vm311_vm9 = vcmp.gt.f32.partialorder %v310_v17, 0.5  ;;  %314 = vst [vmem:[#allocation3] sm:$0x1] %v310_v17  ;;  %v2009_v17 = vld [vmem:[#allocation4] sm:$0xff] (%p52_p2) }
 0x3d6   : > { %v1153_v18 = vsel %vm311_vm9, 1.0, %v1766_v5 }
 0x3d7   : > { %315 = vst [vmem:[#allocation2] sm:$0x1] %v1153_v18  ;;  %v2024_v18 = vld [vmem:[#allocation4 + $0x10] sm:$0xff] (%p52_p2) }
 0x3dc   : > { %v368_v21 = vld [vmem:[#allocation3] sm:$0x1] }
 0x3dd   : > { %vm369_vm10 = vcmp.gt.f32.partialorder %v368_v21, 0.5  ;;  %v372_v26 = vmul.f32 0.9, %v368_v21  ;;  %v2042_v21 = vld [vmem:[#allocation4 + $0x28] sm:$0xff] (%p52_p2) }
 0x3de   : > { %v317_v19 = vld [vmem:[#allocation2] sm:$0x1]  ;;  %v1154_v24 = vsel %vm369_vm10, 1.0, %v1766_v5 }
 0x3df   : > { %v318_v20 = vpack.c.bf16 %v317_v19, %v317_v19  ;;  %v374_v30 = vmul.f32 0.5, %v1154_v24  ;;  %v2030_v19 = vld [vmem:[#allocation4 + $0x18] sm:$0xff] (%p52_p2) }
 0x3e0   :  { %v2054_v24 = vld [vmem:[#allocation4 + $0x38] sm:$0xff] (%p52_p2) }
 0x3e1   : > { %1420 = vmatmul.mubr.bf16.vlgmr.msra.gmra.mrb[8].mxu0 %v318_v20  ;;  %v2036_v20 = vld [vmem:[#allocation4 + $0x20] sm:$0xff] (%p52_p2) }
 0x3e2   : > { %1444 = vmatpush3.bf16.msra.mxu0 %v1829_v4  ;;  %1459 = vmatprep.mubr.msk.bf16.mxu0 %vm1767_vm1, %v1766_v5 }
 0x3e3   : > { %1445 = vmatprep.subr.bf16.mxu0 %v1766_v5 }
 0x3e6   : > { %1446 = vmatpush3.bf16.msra.mxu0 %v1837_v6 }
 0x3e7   : > { %1447 = vmatprep.subr.bf16.mxu0 %v1766_v5 }
 0x3ea   : > { %1448 = vmatpush3.bf16.msra.mxu0 %v1845_v7 }
 0x3eb   : > { %1449 = vmatprep.subr.bf16.mxu0 %v1766_v5 }
 0x3ee   : > { %1450 = vmatpush3.bf16.msra.mxu0 %v1851_v8 }
 0x3ef   : > { %1451 = vmatprep.subr.bf16.mxu0 %v1766_v5 }
 0x3f2   : > { %1452 = vmatpush3.bf16.msra.mxu0 %v1857_v9 }
 0x3f3   : > { %1453 = vmatprep.subr.bf16.mxu0 %v1766_v5 }
 0x3f6   : > { %1454 = vmatpush3.bf16.msra.mxu0 %v1863_v10 }
 0x3f7   : > { %1455 = vmatprep.subr.bf16.mxu0 %v1766_v5 }
 0x3fa   : > { %1456 = vmatpush3.bf16.msra.mxu0 %v1869_v11 }
 0x3fb   : > { %1457 = vmatprep.subr.bf16.mxu0 %v1766_v5 }
 0x3fe   : > { %1458 = vmatpush3.bf16.msra.mxu0 %v1875_v13 }
 0x3ff   :  { %1483 = vmatprep.subr.bf16.mxu0 (%p52_p2), %v1765_v2 }
 0x4b4   : > { %v361_v23 = vpop.f32.mrb[8].mxu0 }
 0x4b5   : > { %v367_v25 = vadd.f32 %v361_v23, %v316_v22  ;;  %v1421_v27 = vpop.f32.mrb[9].mxu0  ;;  %v2048_v22 = vld [vmem:[#allocation4 + $0x30] sm:$0xff] (%p52_p2) }
 0x4b6   : > { %v364_v28 = vpop.f32.mrb[10].mxu0  ;;  %v576_v27 = vld [vmem:[#allocation6] sm:$0x1] (%p52_p2) }
 0x4b7   : > { %v373_v29 = vadd.f32 %v372_v26, %v367_v25  ;;  %v1422_v31 = vpop.f32.mrb[11].mxu0 }
 0x4b9   : > { %v375_v32 = vsub.f32 %v373_v29, %v374_v30 }
 0x4bb   : > { %vm376_vm11 = vcmp.gt.f32.partialorder %v375_v32, 0.5  ;;  %379 = vst [vmem:[#allocation3] sm:$0x1] %v375_v32 }
 0x4bc   : > { %v1155_v33 = vsel %vm376_vm11, 1.0, %v1766_v5 }
 0x4bd   : > { %380 = vst [vmem:[#allocation2] sm:$0x1] %v1155_v33 }
 0x4c4   : > { %v382_v34 = vld [vmem:[#allocation2] sm:$0x1] }
 0x4c5   : > { %v383_v35 = vpack.c.bf16 %v382_v34, %v382_v34 }
 0x4c7   : > { %1440 = vmatmul.mubr.bf16.vlgmr.msra.gmra.mrb[8].mxu1 %v383_v35 }
 0x4c8   : > { %1464 = vmatpush3.bf16.msra.mxu1 %v1829_v4  ;;  %1479 = vmatprep.mubr.msk.bf16.mxu1 %vm1767_vm1, %v1766_v5  ;;  %v433_v4 = vld [vmem:[#allocation3] sm:$0x1] }
 0x4c9   : > { %1465 = vmatprep.subr.bf16.mxu1 %v1766_v5  ;;  %vm434_vm12 = vcmp.gt.f32.partialorder %v433_v4, 0.5 }
 0x4cc   : > { %1466 = vmatpush3.bf16.msra.mxu1 %v1837_v6  ;;  %v381_v6 = vld [vmem:[#allocation6 + $0x5] sm:$0x1] }
 0x4cd   : > { %1467 = vmatprep.subr.bf16.mxu1 %v1766_v5 }
 0x4d0   : > { %1468 = vmatpush3.bf16.msra.mxu1 %v1845_v7 }
 0x4d1   : > { %1469 = vmatprep.subr.bf16.mxu1 %v1766_v5 }
 0x4d4   : > { %1470 = vmatpush3.bf16.msra.mxu1 %v1851_v8  ;;  %v1156_v8 = vsel %vm434_vm12, 1.0, %v1766_v5 }
 0x4d5   : > { %1471 = vmatprep.subr.bf16.mxu1 %v1766_v5 }
 0x4d8   : > { %1472 = vmatpush3.bf16.msra.mxu1 %v1857_v9  ;;  %v437_v9 = vmul.f32 0.9, %v433_v4 }
 0x4d9   : > { %1473 = vmatprep.subr.bf16.mxu1 %v1766_v5 }
 0x4dc   : > { %1474 = vmatpush3.bf16.msra.mxu1 %v1863_v10  ;;  %v439_v10 = vmul.f32 0.5, %v1156_v8 }
 0x4dd   : > { %1475 = vmatprep.subr.bf16.mxu1 %v1766_v5 }
 0x4e0   : > { %1476 = vmatpush3.bf16.msra.mxu1 %v1869_v11 }
 0x4e1   : > { %1477 = vmatprep.subr.bf16.mxu1 %v1766_v5 }
 0x4e4   : > { %1478 = vmatpush3.bf16.msra.mxu1 %v1875_v13 }
 0x4e5   :  { %1503 = vmatprep.subr.bf16.mxu1 (%p52_p2), %v1765_v2 }
 0x59a   : > { %v426_v7 = vpop.f32.mrb[8].mxu1 }
 0x59b   : > { %v432_v36 = vadd.f32 %v426_v7, %v381_v6  ;;  %v1441_v37 = vpop.f32.mrb[9].mxu1 }
 0x59c   : > { %v429_v38 = vpop.f32.mrb[10].mxu1  ;;  %v642_v37 = vld [vmem:[#allocation6 + $0x1] sm:$0x1] (%p52_p2) }
 0x59d   : > { %v438_v39 = vadd.f32 %v437_v9, %v432_v36  ;;  %v1442_v40 = vpop.f32.mrb[11].mxu1 }
 0x59f   : > { %v440_v41 = vsub.f32 %v438_v39, %v439_v10 }
 0x5a1   : > { %vm441_vm13 = vcmp.gt.f32.partialorder %v440_v41, 0.5  ;;  %444 = vst [vmem:[#allocation3] sm:$0x1] %v440_v41 }
 0x5a2   : > { %v1157_v11 = vsel %vm441_vm13, 1.0, %v1766_v5 }
 0x5a3   : > { %445 = vst [vmem:[#allocation2] sm:$0x1] %v1157_v11 }
 0x5a8   : > { %v498_v43 = vld [vmem:[#allocation3] sm:$0x1] }
 0x5a9   : > { %vm499_vm14 = vcmp.gt.f32.partialorder %v498_v43, 0.5  ;;  %v502_v48 = vmul.f32 0.9, %v498_v43 }
 0x5aa   : > { %v447_v13 = vld [vmem:[#allocation2] sm:$0x1]  ;;  %v1158_v46 = vsel %vm499_vm14, 1.0, %v1766_v5 }
 0x5ab   : > { %v448_v42 = vpack.c.bf16 %v447_v13, %v447_v13  ;;  %v504_v52 = vmul.f32 0.5, %v1158_v46 }
 0x5ad   : > { %1460 = vmatmul.mubr.bf16.vlgmr.msra.gmra.mrb[12].mxu0 %v448_v42 }
 0x5ae   :  { %1484 = vmatpush3.bf16.msra.mxu0 (%p52_p2), %v2009_v17  ;;  %1499 = vmatprep.mubr.msk.bf16.mxu0 (%p52_p2), %vm1768_vm2, %v1765_v2 }
 0x5af   :  { %1485 = vmatprep.subr.bf16.mxu0 (%p52_p2), %v1765_v2 }
 0x680   : > { %v491_v45 = vpop.f32.mrb[12].mxu0 }
 0x681   : > { %v497_v47 = vadd.f32 %v491_v45, %v446_v44  ;;  %v1461_v49 = vpop.f32.mrb[13].mxu0 }
 0x682   : > { %v494_v50 = vpop.f32.mrb[14].mxu0  ;;  %v708_v49 = vld [vmem:[#allocation6 + $0x2] sm:$0x1] (%p52_p2) }
 0x683   : > { %v503_v51 = vadd.f32 %v502_v48, %v497_v47  ;;  %v1462_v53 = vpop.f32.mrb[15].mxu0 }
 0x685   : > { %v505_v54 = vsub.f32 %v503_v51, %v504_v52 }
 0x687   : > { %vm506_vm15 = vcmp.gt.f32.partialorder %v505_v54, 0.5  ;;  %509 = vst [vmem:[#allocation3] sm:$0x1] %v505_v54 }
 0x688   : > { %v1159_v55 = vsel %vm506_vm15, 1.0, %v1766_v5 }
 0x689   : > { %510 = vst [vmem:[#allocation2] sm:$0x1] %v1159_v55 }
 0x68e   : > { %v563_v58 = vld [vmem:[#allocation3] sm:$0x1] }
 0x68f   : > { %vm564_vm0 = vcmp.gt.f32.partialorder %v563_v58, 0.5  ;;  %v567_v63 = vmul.f32 0.9, %v563_v58 }
 0x690   : > { %v512_v56 = vld [vmem:[#allocation2] sm:$0x1]  ;;  %v1160_v61 = vsel %vm564_vm0, 1.0, %v1766_v5 }
 0x691   : > { %v513_v57 = vpack.c.bf16 %v512_v56, %v512_v56  ;;  %v569_v12 = vmul.f32 0.5, %v1160_v61 }
 0x693   : > { %1480 = vmatmul.mubr.bf16.vlgmr.msra.gmra.mrb[12].mxu1 %v513_v57 }
 0x694   :  { %1504 = vmatpush3.bf16.msra.mxu1 (%p52_p2), %v2009_v17  ;;  %1519 = vmatprep.mubr.msk.bf16.mxu1 (%p52_p2), %vm1768_vm2, %v1765_v2 }
 0x695   :  { %1505 = vmatprep.subr.bf16.mxu1 (%p52_p2), %v1765_v2 }
 0x766   : > { %v556_v60 = vpop.f32.mrb[12].mxu1 }
 0x767   : > { %v562_v62 = vadd.f32 %v556_v60, %v511_v59  ;;  %v1481_v0 = vpop.f32.mrb[13].mxu1 }
 0x768   : > { %v559_v1 = vpop.f32.mrb[14].mxu1  ;;  %v774_v0 = vld [vmem:[#allocation6 + $0x3] sm:$0x1] (%p52_p2) }
 0x769   : > { %v568_v3 = vadd.f32 %v567_v63, %v562_v62  ;;  %v1482_v14 = vpop.f32.mrb[15].mxu1  ;;  %54 = sbr.rel (!%p52_p2) target bundleno = 40 (0x28), region = 51 }
 0x76b   : > { %v570_v15 = vsub.f32 %v568_v3, %v569_v12 }
 0x76d   : > { %vm571_vm1 = vcmp.gt.f32.partialorder %v570_v15, 0.5  ;;  %574 = vst [vmem:[#allocation3] sm:$0x1] %v570_v15 }
 0x76e   : > { %v1161_v16 = vsel %vm571_vm1, 1.0, %v1766_v5  ;;  %v2016_v5 = vld [vmem:[#allocation4 + $0x8] sm:$0xff] (%p52_p2) }
 0x76f   : > { %575 = vst [vmem:[#allocation2] sm:$0x1] %v1161_v16  ;;  %1486 = vmatpush3.bf16.msra.mxu0 (%p52_p2), %v2016_v5  ;;  %1506 = vmatpush3.bf16.msra.mxu1 (%p52_p2), %v2016_v5 }
 0x770   :  { %1487 = vmatprep.subr.bf16.mxu0 %v1765_v2  ;;  %1507 = vmatprep.subr.bf16.mxu1 %v1765_v2 }
 0x773   :  { %1488 = vmatpush3.bf16.msra.mxu0 %v2024_v18  ;;  %1508 = vmatpush3.bf16.msra.mxu1 %v2024_v18 }
 0x774   :  { %1489 = vmatprep.subr.bf16.mxu0 %v1765_v2  ;;  %1509 = vmatprep.subr.bf16.mxu1 %v1765_v2  ;;  %v628_v26 = vld [vmem:[#allocation3] sm:$0x1] }
 0x775   :  { %vm629_vm3 = vcmp.gt.f32.partialorder %v628_v26, 0.5  ;;  %v632_v29 = vmul.f32 0.9, %v628_v26 }
 0x776   :  { %v577_v23 = vld [vmem:[#allocation2] sm:$0x1]  ;;  %v1162_v28 = vsel %vm629_vm3, 1.0, %v1765_v2 }
 0x777   :  { %1490 = vmatpush3.bf16.msra.mxu0 %v2030_v19  ;;  %1510 = vmatpush3.bf16.msra.mxu1 %v2030_v19  ;;  %v578_v25 = vpack.c.bf16 %v577_v23, %v577_v23  ;;  %v634_v32 = vmul.f32 0.5, %v1162_v28 }
 0x778   :  { %1491 = vmatprep.subr.bf16.mxu0 %v1765_v2  ;;  %1511 = vmatprep.subr.bf16.mxu1 %v1765_v2 }
 0x77b   :  { %1492 = vmatpush3.bf16.msra.mxu0 %v2036_v20  ;;  %1512 = vmatpush3.bf16.msra.mxu1 %v2036_v20 }
 0x77c   :  { %1493 = vmatprep.subr.bf16.mxu0 %v1765_v2  ;;  %1513 = vmatprep.subr.bf16.mxu1 %v1765_v2 }
 0x77f   :  { %1494 = vmatpush3.bf16.msra.mxu0 %v2042_v21  ;;  %1514 = vmatpush3.bf16.msra.mxu1 %v2042_v21 }
 0x780   :  { %1495 = vmatprep.subr.bf16.mxu0 %v1765_v2  ;;  %1515 = vmatprep.subr.bf16.mxu1 %v1765_v2 }
 0x783   :  { %1496 = vmatpush3.bf16.msra.mxu0 %v2048_v22  ;;  %1516 = vmatpush3.bf16.msra.mxu1 %v2048_v22 }
 0x784   :  { %1497 = vmatprep.subr.bf16.mxu0 %v1765_v2  ;;  %1517 = vmatprep.subr.bf16.mxu1 %v1765_v2 }
 0x787   :  { %1498 = vmatpush3.bf16.msra.mxu0 %v2054_v24  ;;  %1518 = vmatpush3.bf16.msra.mxu1 %v2054_v24 }
 0x788   :  { %1523 = vmatprep.subr.bf16.mxu0 %v1765_v2  ;;  %1543 = vmatprep.subr.bf16.mxu1 %v1765_v2 }
 0x78a   :  { %1500 = vmatmul.mubr.bf16.vlgmr.msra.gmra.mrb[0].mxu0 %v578_v25 }
 0x78b   :  { %1524 = vmatpush3.bf16.msra.mxu0 %v2009_v17  ;;  %1539 = vmatprep.mubr.msk.bf16.mxu0 %vm1768_vm2, %v1765_v2 }
 0x78c   :  { %1525 = vmatprep.subr.bf16.mxu0 %v1765_v2 }
 0x78f   :  { %1526 = vmatpush3.bf16.msra.mxu0 %v2016_v5 }
 0x790   :  { %1527 = vmatprep.subr.bf16.mxu0 %v1765_v2 }
 0x793   :  { %1528 = vmatpush3.bf16.msra.mxu0 %v2024_v18 }
 0x794   :  { %1529 = vmatprep.subr.bf16.mxu0 %v1765_v2 }
 0x797   :  { %1530 = vmatpush3.bf16.msra.mxu0 %v2030_v19 }
 0x798   :  { %1531 = vmatprep.subr.bf16.mxu0 %v1765_v2 }
 0x79b   :  { %1532 = vmatpush3.bf16.msra.mxu0 %v2036_v20 }
 0x79c   :  { %1533 = vmatprep.subr.bf16.mxu0 %v1765_v2 }
 0x79f   :  { %1534 = vmatpush3.bf16.msra.mxu0 %v2042_v21 }
 0x7a0   :  { %1535 = vmatprep.subr.bf16.mxu0 %v1765_v2 }
 0x7a3   :  { %1536 = vmatpush3.bf16.msra.mxu0 %v2048_v22 }
 0x7a4   :  { %1537 = vmatprep.subr.bf16.mxu0 %v1765_v2 }
 0x7a7   :  { %1538 = vmatpush3.bf16.msra.mxu0 %v2054_v24 }
 0x7a8   :  { %1563 = vmatprep.subr.bf16.mxu0 %v1765_v2 }
 0x85d   :  { %v621_v30 = vpop.f32.mrb[0].mxu0 }
 0x85e   :  { %v627_v31 = vadd.f32 %v621_v30, %v576_v27  ;;  %v1501_v33 = vpop.f32.mrb[1].mxu0 }
 0x85f   :  { %v624_v34 = vpop.f32.mrb[2].mxu0 }
 0x860   :  { %v633_v35 = vadd.f32 %v632_v29, %v627_v31  ;;  %v1502_v4 = vpop.f32.mrb[3].mxu0 }
 0x862   :  { %v635_v6 = vsub.f32 %v633_v35, %v634_v32  ;;  %v840_v32 = vld [vmem:[#allocation6 + $0x4] sm:$0x1] }
 0x864   :  { %vm636_vm4 = vcmp.gt.f32.partialorder %v635_v6, 0.5  ;;  %639 = vst [vmem:[#allocation3] sm:$0x1] %v635_v6 }
 0x865   :  { %v1163_v7 = vsel %vm636_vm4, 1.0, %v1765_v2 }
 0x866   :  { %640 = vst [vmem:[#allocation2] sm:$0x1] %v1163_v7  ;;  %641 = vst [vmem:[#allocation9] sm:$0x1] %v1163_v7 }
 0x86b   :  { %v694_v9 = vld [vmem:[#allocation3] sm:$0x1] }
 0x86c   :  { %vm695_vm5 = vcmp.gt.f32.partialorder %v694_v9, 0.5  ;;  %v698_v40 = vmul.f32 0.9, %v694_v9 }
 0x86d   :  { %v643_v8 = vld [vmem:[#allocation2] sm:$0x1]  ;;  %v1164_v39 = vsel %vm695_vm5, 1.0, %v1765_v2 }
 0x86e   :  { %v644_v36 = vpack.c.bf16 %v643_v8, %v643_v8  ;;  %v700_v42 = vmul.f32 0.5, %v1164_v39 }
 0x870   :  { %1520 = vmatmul.mubr.bf16.vlgmr.msra.gmra.mrb[0].mxu1 %v644_v36 }
 0x871   :  { %1544 = vmatpush3.bf16.msra.mxu1 %v2009_v17  ;;  %1559 = vmatprep.mubr.msk.bf16.mxu1 %vm1768_vm2, %v1765_v2 }
 0x872   :  { %1545 = vmatprep.subr.bf16.mxu1 %v1765_v2 }
 0x875   :  { %1546 = vmatpush3.bf16.msra.mxu1 %v2016_v5 }
 0x876   :  { %1547 = vmatprep.subr.bf16.mxu1 %v1765_v2 }
 0x879   :  { %1548 = vmatpush3.bf16.msra.mxu1 %v2024_v18 }
 0x87a   :  { %1549 = vmatprep.subr.bf16.mxu1 %v1765_v2 }
 0x87d   :  { %1550 = vmatpush3.bf16.msra.mxu1 %v2030_v19 }
 0x87e   :  { %1551 = vmatprep.subr.bf16.mxu1 %v1765_v2 }
 0x881   :  { %1552 = vmatpush3.bf16.msra.mxu1 %v2036_v20 }
 0x882   :  { %1553 = vmatprep.subr.bf16.mxu1 %v1765_v2 }
 0x885   :  { %1554 = vmatpush3.bf16.msra.mxu1 %v2042_v21 }
 0x886   :  { %1555 = vmatprep.subr.bf16.mxu1 %v1765_v2 }
 0x889   :  { %1556 = vmatpush3.bf16.msra.mxu1 %v2048_v22 }
 0x88a   :  { %1557 = vmatprep.subr.bf16.mxu1 %v1765_v2 }
 0x88d   :  { %1558 = vmatpush3.bf16.msra.mxu1 %v2054_v24 }
 0x88e   :  { %1583 = vmatprep.subr.bf16.mxu1 %v1765_v2 }
 0x943   :  { %v687_v38 = vpop.f32.mrb[0].mxu1 }
 0x944   :  { %v693_v10 = vadd.f32 %v687_v38, %v642_v37  ;;  %v1521_v41 = vpop.f32.mrb[1].mxu1 }
 0x945   :  { %v690_v11 = vpop.f32.mrb[2].mxu1 }
 0x946   :  { %v699_v13 = vadd.f32 %v698_v40, %v693_v10  ;;  %v1522_v43 = vpop.f32.mrb[3].mxu1 }
 0x948   :  { %v701_v44 = vsub.f32 %v699_v13, %v700_v42 }
 0x94a   :  { %vm702_vm6 = vcmp.gt.f32.partialorder %v701_v44, 0.5  ;;  %705 = vst [vmem:[#allocation3] sm:$0x1] %v701_v44 }
 0x94b   :  { %v1165_v45 = vsel %vm702_vm6, 1.0, %v1765_v2 }
 0x94c   :  { %706 = vst [vmem:[#allocation2] sm:$0x1] %v1165_v45  ;;  %707 = vst [vmem:[#allocation9 + $0x1] sm:$0x1] %v1165_v45 }
 0x951   :  { %v760_v48 = vld [vmem:[#allocation3] sm:$0x1] }
 0x952   :  { %vm761_vm7 = vcmp.gt.f32.partialorder %v760_v48, 0.5  ;;  %v764_v53 = vmul.f32 0.9, %v760_v48 }
 0x953   :  { %v709_v46 = vld [vmem:[#allocation2] sm:$0x1]  ;;  %v1166_v51 = vsel %vm761_vm7, 1.0, %v1765_v2 }
 0x954   :  { %v710_v47 = vpack.c.bf16 %v709_v46, %v709_v46  ;;  %v766_v57 = vmul.f32 0.5, %v1166_v51  ;;  %v972_v46 = vld [vmem:[#allocation6 + $0x6] sm:$0x1] }
 0x956   :  { %1540 = vmatmul.mubr.bf16.vlgmr.msra.gmra.mrb[4].mxu0 %v710_v47 }
 0x957   :  { %1564 = vmatpush3.bf16.msra.mxu0 %v2009_v17  ;;  %1579 = vmatprep.mubr.msk.bf16.mxu0 %vm1768_vm2, %v1765_v2 }
 0x958   :  { %1565 = vmatprep.subr.bf16.mxu0 %v1765_v2 }
 0x95b   :  { %1566 = vmatpush3.bf16.msra.mxu0 %v2016_v5 }
 0x95c   :  { %1567 = vmatprep.subr.bf16.mxu0 %v1765_v2 }
 0x95f   :  { %1568 = vmatpush3.bf16.msra.mxu0 %v2024_v18 }
 0x960   :  { %1569 = vmatprep.subr.bf16.mxu0 %v1765_v2 }
 0x963   :  { %1570 = vmatpush3.bf16.msra.mxu0 %v2030_v19 }
 0x964   :  { %1571 = vmatprep.subr.bf16.mxu0 %v1765_v2 }
 0x967   :  { %1572 = vmatpush3.bf16.msra.mxu0 %v2036_v20 }
 0x968   :  { %1573 = vmatprep.subr.bf16.mxu0 %v1765_v2 }
 0x96b   :  { %1574 = vmatpush3.bf16.msra.mxu0 %v2042_v21 }
 0x96c   :  { %1575 = vmatprep.subr.bf16.mxu0 %v1765_v2 }
 0x96f   :  { %1576 = vmatpush3.bf16.msra.mxu0 %v2048_v22 }
 0x970   :  { %1577 = vmatprep.subr.bf16.mxu0 %v1765_v2 }
 0x973   :  { %1578 = vmatpush3.bf16.msra.mxu0 %v2054_v24 }
 0x974   :  { %1603 = vmatprep.subr.bf16.mxu0 %v1765_v2 }
 0xa29   :  { %v753_v50 = vpop.f32.mrb[4].mxu0 }
 0xa2a   :  { %v759_v52 = vadd.f32 %v753_v50, %v708_v49  ;;  %v1541_v54 = vpop.f32.mrb[5].mxu0 }
 0xa2b   :  { %v756_v55 = vpop.f32.mrb[6].mxu0 }
 0xa2c   :  { %v765_v56 = vadd.f32 %v764_v53, %v759_v52  ;;  %v1542_v58 = vpop.f32.mrb[7].mxu0 }
 0xa2e   :  { %v767_v59 = vsub.f32 %v765_v56, %v766_v57 }
 0xa30   :  { %vm768_vm8 = vcmp.gt.f32.partialorder %v767_v59, 0.5  ;;  %771 = vst [vmem:[#allocation3] sm:$0x1] %v767_v59 }
 0xa31   :  { %v1167_v60 = vsel %vm768_vm8, 1.0, %v1765_v2 }
 0xa32   :  { %772 = vst [vmem:[#allocation2] sm:$0x1] %v1167_v60  ;;  %773 = vst [vmem:[#allocation9 + $0x2] sm:$0x1] %v1167_v60 }
 0xa37   :  { %v826_v63 = vld [vmem:[#allocation3] sm:$0x1] }
 0xa38   :  { %vm827_vm9 = vcmp.gt.f32.partialorder %v826_v63, 0.5  ;;  %v830_v14 = vmul.f32 0.9, %v826_v63 }
 0xa39   :  { %v775_v61 = vld [vmem:[#allocation2] sm:$0x1]  ;;  %v1168_v3 = vsel %vm827_vm9, 1.0, %v1765_v2 }
 0xa3a   :  { %v776_v62 = vpack.c.bf16 %v775_v61, %v775_v61  ;;  %v832_v25 = vmul.f32 0.5, %v1168_v3  ;;  %v1038_v61 = vld [vmem:[#allocation6 + $0x7] sm:$0x1] }
 0xa3c   :  { %1560 = vmatmul.mubr.bf16.vlgmr.msra.gmra.mrb[4].mxu1 %v776_v62 }
 0xa3d   :  { %1584 = vmatpush3.bf16.msra.mxu1 %v2009_v17  ;;  %1599 = vmatprep.mubr.msk.bf16.mxu1 %vm1768_vm2, %v1765_v2 }
 0xa3e   :  { %1585 = vmatprep.subr.bf16.mxu1 %v1765_v2 }
 0xa41   :  { %1586 = vmatpush3.bf16.msra.mxu1 %v2016_v5 }
 0xa42   :  { %1587 = vmatprep.subr.bf16.mxu1 %v1765_v2 }
 0xa45   :  { %1588 = vmatpush3.bf16.msra.mxu1 %v2024_v18 }
 0xa46   :  { %1589 = vmatprep.subr.bf16.mxu1 %v1765_v2 }
 0xa49   :  { %1590 = vmatpush3.bf16.msra.mxu1 %v2030_v19 }
 0xa4a   :  { %1591 = vmatprep.subr.bf16.mxu1 %v1765_v2 }
 0xa4d   :  { %1592 = vmatpush3.bf16.msra.mxu1 %v2036_v20 }
 0xa4e   :  { %1593 = vmatprep.subr.bf16.mxu1 %v1765_v2 }
 0xa51   :  { %1594 = vmatpush3.bf16.msra.mxu1 %v2042_v21 }
 0xa52   :  { %1595 = vmatprep.subr.bf16.mxu1 %v1765_v2 }
 0xa55   :  { %1596 = vmatpush3.bf16.msra.mxu1 %v2048_v22 }
 0xa56   :  { %1597 = vmatprep.subr.bf16.mxu1 %v1765_v2 }
 0xa59   :  { %1598 = vmatpush3.bf16.msra.mxu1 %v2054_v24 }
 0xa5a   :  { %1623 = vmatprep.subr.bf16.mxu1 %v1765_v2 }
 0xb0f   :  { %v819_v1 = vpop.f32.mrb[4].mxu1 }
 0xb10   :  { %v825_v12 = vadd.f32 %v819_v1, %v774_v0  ;;  %v1561_v15 = vpop.f32.mrb[5].mxu1 }
 0xb11   :  { %v822_v16 = vpop.f32.mrb[6].mxu1 }
 0xb12   :  { %v831_v23 = vadd.f32 %v830_v14, %v825_v12  ;;  %v1562_v26 = vpop.f32.mrb[7].mxu1 }
 0xb14   :  { %v833_v27 = vsub.f32 %v831_v23, %v832_v25 }
 0xb16   :  { %vm834_vm10 = vcmp.gt.f32.partialorder %v833_v27, 0.5  ;;  %837 = vst [vmem:[#allocation3] sm:$0x1] %v833_v27 }
 0xb17   :  { %v1169_v28 = vsel %vm834_vm10, 1.0, %v1765_v2 }
 0xb18   :  { %838 = vst [vmem:[#allocation2] sm:$0x1] %v1169_v28  ;;  %839 = vst [vmem:[#allocation9 + $0x3] sm:$0x1] %v1169_v28 }
 0xb1d   :  { %v892_v31 = vld [vmem:[#allocation3] sm:$0x1] }
 0xb1e   :  { %vm893_vm11 = vcmp.gt.f32.partialorder %v892_v31, 0.5  ;;  %v896_v4 = vmul.f32 0.9, %v892_v31 }
 0xb1f   :  { %v841_v29 = vld [vmem:[#allocation2] sm:$0x1]  ;;  %v1170_v34 = vsel %vm893_vm11, 1.0, %v1765_v2 }
 0xb20   :  { %v842_v30 = vpack.c.bf16 %v841_v29, %v841_v29  ;;  %v898_v36 = vmul.f32 0.5, %v1170_v34 }
 0xb22   :  { %1580 = vmatmul.mubr.bf16.vlgmr.msra.gmra.mrb[8].mxu0 %v842_v30 }
 0xb23   :  { %1604 = vmatpush3.bf16.msra.mxu0 %v2009_v17  ;;  %1619 = vmatprep.mubr.msk.bf16.mxu0 %vm1768_vm2, %v1765_v2 }
 0xb24   :  { %1605 = vmatprep.subr.bf16.mxu0 %v1765_v2 }
 0xb27   :  { %1606 = vmatpush3.bf16.msra.mxu0 %v2016_v5 }
 0xb28   :  { %1607 = vmatprep.subr.bf16.mxu0 %v1765_v2 }
 0xb2b   :  { %1608 = vmatpush3.bf16.msra.mxu0 %v2024_v18 }
 0xb2c   :  { %1609 = vmatprep.subr.bf16.mxu0 %v1765_v2 }
 0xb2f   :  { %1610 = vmatpush3.bf16.msra.mxu0 %v2030_v19 }
 0xb30   :  { %1611 = vmatprep.subr.bf16.mxu0 %v1765_v2 }
 0xb33   :  { %1612 = vmatpush3.bf16.msra.mxu0 %v2036_v20 }
 0xb34   :  { %1613 = vmatprep.subr.bf16.mxu0 %v1765_v2 }
 0xb37   :  { %1614 = vmatpush3.bf16.msra.mxu0 %v2042_v21 }
 0xb38   :  { %1615 = vmatprep.subr.bf16.mxu0 %v1765_v2 }
 0xb3b   :  { %1616 = vmatpush3.bf16.msra.mxu0 %v2048_v22 }
 0xb3c   :  { %1617 = vmatprep.subr.bf16.mxu0 %v1765_v2 }
 0xb3f   :  { %1618 = vmatpush3.bf16.msra.mxu0 %v2054_v24 }
 0xbf5   :  { %v885_v33 = vpop.f32.mrb[8].mxu0 }
 0xbf6   :  { %v891_v35 = vadd.f32 %v885_v33, %v840_v32  ;;  %v1581_v6 = vpop.f32.mrb[9].mxu0 }
 0xbf7   :  { %v888_v7 = vpop.f32.mrb[10].mxu0 }
 0xbf8   :  { %v897_v8 = vadd.f32 %v896_v4, %v891_v35  ;;  %v1582_v9 = vpop.f32.mrb[11].mxu0 }
 0xbfa   :  { %v899_v37 = vsub.f32 %v897_v8, %v898_v36 }
 0xbfc   :  { %vm900_vm12 = vcmp.gt.f32.partialorder %v899_v37, 0.5  ;;  %903 = vst [vmem:[#allocation3] sm:$0x1] %v899_v37 }
 0xbfd   :  { %v1171_v38 = vsel %vm900_vm12, 1.0, %v1765_v2 }
 0xbfe   :  { %904 = vst [vmem:[#allocation2] sm:$0x1] %v1171_v38  ;;  %905 = vst [vmem:[#allocation9 + $0x4] sm:$0x1] %v1171_v38 }
 0xc05   :  { %v907_v39 = vld [vmem:[#allocation2] sm:$0x1] }
 0xc06   :  { %v908_v10 = vpack.c.bf16 %v907_v39, %v907_v39 }
 0xc08   :  { %1600 = vmatmul.mubr.bf16.vlgmr.msra.gmra.mrb[8].mxu1 %v908_v10 }
 0xc09   :  { %1624 = vmatpush3.bf16.msra.mxu1 %v2009_v17  ;;  %1639 = vmatprep.mubr.msk.bf16.mxu1 %vm1768_vm2, %v1765_v2  ;;  %v958_v17 = vld [vmem:[#allocation3] sm:$0x1] }
 0xc0a   :  { %1625 = vmatprep.subr.bf16.mxu1 %v1765_v2  ;;  %vm959_vm13 = vcmp.gt.f32.partialorder %v958_v17, 0.5 }
 0xc0d   :  { %1626 = vmatpush3.bf16.msra.mxu1 %v2016_v5  ;;  %v906_v5 = vld [vmem:[#allocation6 + $0x5] sm:$0x1] }
 0xc0e   :  { %1627 = vmatprep.subr.bf16.mxu1 %v1765_v2 }
 0xc11   :  { %1628 = vmatpush3.bf16.msra.mxu1 %v2024_v18 }
 0xc12   :  { %1629 = vmatprep.subr.bf16.mxu1 %v1765_v2 }
 0xc15   :  { %1630 = vmatpush3.bf16.msra.mxu1 %v2030_v19  ;;  %v1172_v19 = vsel %vm959_vm13, 1.0, %v1765_v2 }
 0xc16   :  { %1631 = vmatprep.subr.bf16.mxu1 %v1765_v2 }
 0xc19   :  { %1632 = vmatpush3.bf16.msra.mxu1 %v2036_v20  ;;  %v962_v20 = vmul.f32 0.9, %v958_v17 }
 0xc1a   :  { %1633 = vmatprep.subr.bf16.mxu1 %v1765_v2 }
 0xc1d   :  { %1634 = vmatpush3.bf16.msra.mxu1 %v2042_v21  ;;  %v964_v21 = vmul.f32 0.5, %v1172_v19 }
 0xc1e   :  { %1635 = vmatprep.subr.bf16.mxu1 %v1765_v2 }
 0xc21   :  { %1636 = vmatpush3.bf16.msra.mxu1 %v2048_v22 }
 0xc22   :  { %1637 = vmatprep.subr.bf16.mxu1 %v1765_v2 }
 0xc25   :  { %1638 = vmatpush3.bf16.msra.mxu1 %v2054_v24 }
 0xcdb   :  { %v951_v18 = vpop.f32.mrb[8].mxu1 }
 0xcdc   :  { %v957_v40 = vadd.f32 %v951_v18, %v906_v5  ;;  %v1601_v41 = vpop.f32.mrb[9].mxu1 }
 0xcdd   :  { %v954_v11 = vpop.f32.mrb[10].mxu1 }
 0xcde   :  { %v963_v13 = vadd.f32 %v962_v20, %v957_v40  ;;  %v1602_v42 = vpop.f32.mrb[11].mxu1 }
 0xce0   :  { %v965_v43 = vsub.f32 %v963_v13, %v964_v21 }
 0xce2   :  { %vm966_vm14 = vcmp.gt.f32.partialorder %v965_v43, 0.5  ;;  %969 = vst [vmem:[#allocation3] sm:$0x1] %v965_v43 }
 0xce3   :  { %v1173_v22 = vsel %vm966_vm14, 1.0, %v1765_v2 }
 0xce4   :  { %970 = vst [vmem:[#allocation2] sm:$0x1] %v1173_v22  ;;  %971 = vst [vmem:[#allocation9 + $0x5] sm:$0x1] %v1173_v22 }
 0xce9   :  { %v1024_v45 = vld [vmem:[#allocation3] sm:$0x1] }
 0xcea   :  { %vm1025_vm15 = vcmp.gt.f32.partialorder %v1024_v45, 0.5  ;;  %v1028_v50 = vmul.f32 0.9, %v1024_v45 }
 0xceb   :  { %v973_v24 = vld [vmem:[#allocation2] sm:$0x1]  ;;  %v1174_v48 = vsel %vm1025_vm15, 1.0, %v1765_v2 }
 0xcec   :  { %v974_v44 = vpack.c.bf16 %v973_v24, %v973_v24  ;;  %v1030_v54 = vmul.f32 0.5, %v1174_v48 }
 0xcee   :  { %1620 = vmatmul.mubr.bf16.vlgmr.msra.gmra.mrb[12].mxu0 %v974_v44 }
 0xdc1   :  { %v1017_v47 = vpop.f32.mrb[12].mxu0 }
 0xdc2   :  { %v1023_v49 = vadd.f32 %v1017_v47, %v972_v46  ;;  %v1621_v51 = vpop.f32.mrb[13].mxu0 }
 0xdc3   :  { %v1020_v52 = vpop.f32.mrb[14].mxu0 }
 0xdc4   :  { %v1029_v53 = vadd.f32 %v1028_v50, %v1023_v49  ;;  %v1622_v55 = vpop.f32.mrb[15].mxu0 }
 0xdc6   :  { %v1031_v56 = vsub.f32 %v1029_v53, %v1030_v54 }
 0xdc8   :  { %vm1032_vm0 = vcmp.gt.f32.partialorder %v1031_v56, 0.5  ;;  %1035 = vst [vmem:[#allocation3] sm:$0x1] %v1031_v56 }
 0xdc9   :  { %v1175_v57 = vsel %vm1032_vm0, 1.0, %v1765_v2 }
 0xdca   :  { %1036 = vst [vmem:[#allocation2] sm:$0x1] %v1175_v57  ;;  %1037 = vst [vmem:[#allocation9 + $0x6] sm:$0x1] %v1175_v57 }
 0xdcf   :  { %v1090_v60 = vld [vmem:[#allocation3] sm:$0x1] }
 0xdd0   :  { %vm1091_vm1 = vcmp.gt.f32.partialorder %v1090_v60, 0.5  ;;  %v1094_v1 = vmul.f32 0.9, %v1090_v60 }
 0xdd1   :  { %v1039_v58 = vld [vmem:[#allocation2] sm:$0x1]  ;;  %v1176_v63 = vsel %vm1091_vm1, 1.0, %v1765_v2 }
 0xdd2   :  { %v1040_v59 = vpack.c.bf16 %v1039_v58, %v1039_v58  ;;  %v1096_v15 = vmul.f32 0.5, %v1176_v63 }
 0xdd4   :  { %1640 = vmatmul.mubr.bf16.vlgmr.msra.gmra.mrb[12].mxu1 %v1040_v59 }
 0xea7   :  { %v1083_v62 = vpop.f32.mrb[12].mxu1 }
 0xea8   :  { %v1089_v0 = vadd.f32 %v1083_v62, %v1038_v61  ;;  %v1641_v3 = vpop.f32.mrb[13].mxu1 }
 0xea9   :  { %v1086_v12 = vpop.f32.mrb[14].mxu1 }
 0xeaa   :  { %v1095_v14 = vadd.f32 %v1094_v1, %v1089_v0  ;;  %v1642_v16 = vpop.f32.mrb[15].mxu1 }
 0xeac   :  { %v1097_v23 = vsub.f32 %v1095_v14, %v1096_v15 }
 0xeae   :  { %vm1098_vm2 = vcmp.gt.f32.partialorder %v1097_v23, 0.5  ;;  %1101 = vst [vmem:[#allocation3] sm:$0x1] %v1097_v23 }
 0xeaf   :  { %v1177_v25 = vsel %vm1098_vm2, 1.0, %v1765_v2 }
 0xeb0   :  { %1102 = vst [vmem:[#allocation2] sm:$0x1] %v1177_v25  ;;  %1103 = vst [vmem:[#allocation9 + $0x7] sm:$0x1] %v1177_v25 }
 0xeb1   :  { %1714 = shalt.err (!%p1711_p7)
}
 0xeb2   :  { %s1715_s20 = scalar_lea.hbm %s2211_s3, 128 }
 0xeb3   :  { %p1716_p8 = scmp.ne.s32.totalorder %s2211_s3, %s1715_s20  ;;  %p1719_p9 = scmp.lt.u32.totalorder %s1715_s20, %s2211_s3 }
 0xeb5   :  { %p1721_p10 = pnand %p1719_p9, %p1716_p8 }
 0xeb7   :  { %1724 = shalt.err (!%p1721_p10)
}
 0xeb8   :  { %1115 = dma.vmem_to_hbm [thread:$0]  %s1113_s2, 128, %s2211_s3, [#allocation8]   ;;  %v1104_v2 = vld [vmem:[#allocation3] sm:$0x1] }
 0xeb9   :  { %1105 = vst [vmem:[#allocation10] sm:$0x1] %v1104_v2  ;;  %s1725_s27 = scalar_lea.vmem %s1123_s16, 16  ;;  %s1729_s28 = scalar_lea.vmem %s1123_s16, 32 }
 0xeba   :  { %p1726_p11 = scmp.ne.s32.totalorder %s1123_s16, %s1725_s27  ;;  %p1730_p12 = scmp.lt.s32.totalorder %s1123_s16, %s1123_s16 }
 0xebb   :  { %p1731_p13 = scmp.lt.s32.totalorder %s1729_s28, %s1725_s27 }
 0xebd   :  { %p1732_p0 = por %p1731_p13, %p1730_p12 }
 0xebf   :  { %p1733_p1 = pnand %p1732_p0, %p1726_p11 }
 0xec1   :  { %1736 = shalt.err (!%p1733_p1)
}
 0xec2   :  { %s1737_s5 = scalar_lea.hbm %s2212_s4, 16 }
 0xec3   :  { %p1738_p2 = scmp.ne.s32.totalorder %s2212_s4, %s1737_s5  ;;  %p1741_p3 = scmp.lt.u32.totalorder %s1737_s5, %s2212_s4 }
 0xec5   :  { %p1743_p4 = pnand %p1741_p3, %p1738_p2 }
 0xec7   :  { %1746 = shalt.err (!%p1743_p4)
}
 0xec8   :  { %1125 = dma.vmem_to_hbm [thread:$0]  %s1123_s16, 16, %s2212_s4, [#allocation11]  }
 0xec9   :  { %1755 = dma.done.wait [#allocation8], 128  }
 0xeca   :  { %1756 = vsyncadd [#allocation8], 4294967168 }
 0xecb   :  { %1757 = dma.done.wait [#allocation11], 16  }
 0xecc   :  { %1758 = vsyncadd [#allocation11], 4294967280 }
 0xecd   :  { %1132 = vsyncpa [#allocation7], 1 }
 0xece   :  { %1133 = vsyncpa [#allocation8], 1 }
 0xecf   :  { %1134 = vsyncpa [#allocation11], 1 }
 0xed0   :  { %1135 = vsyncmov [#allocation5] }
 0xed3   :  { %s1136_s10 = vpop.sfrf %1135 }
 0xed4   :  { %p1178_p5 = scmp.ne.s32.totalorder %s1136_s10, 0 }
 0xed6   :  { %1140 = shalt.err (%p1178_p5)  }

</bundles_post_ra>
